<compile_context>
chip_gen: v7x
topology: tpu7x:2x2x1
jax: 0.10.0
libtpu: 0.0.40
codegen_flags: <defaults>
</compile_context>

<pallas_src>
import jax
import jax.numpy as jnp
import numpy as np
from jax import lax
from jax.experimental import pallas as pl
from jax.experimental.pallas import tpu as pltpu

EPS = 1e-5  # torch.nn.BatchNorm3d default


def _make_kernel(D, H, W, Cin, Cout):
    Dp, Hp, Wp = D + 2, H + 2, W + 2
    DH = D * H
    Kres = W * Cin          # residual (1x1x1 conv) contraction depth
    K2 = 9 * Wp * Cout      # conv2 contraction depth

    def kernel(x_ref, w1_ref, t1_ref, w2_ref, t2_ref, o_ref,
               xpad_ref, hpad_ref, lhs1_ref, lhs2_ref):
        # x_ref:   (D, H, W*Cin) f32        unpadded input slab, one batch element
        # w1_ref:  (9*Wp*Cin,        W*Cout) bf16  width-structured conv1 weight (BN1 scale folded)
        # w2_ref:  (9*Wp*Cout+W*Cin, W*Cout) bf16  conv2 weight (BN2 scale folded) + residual rows
        # t1/t2_ref: (1, W*Cout) f32        folded shifts (bias+BN beta [+ residual bias])
        # o_ref:   (D//2, (H//2)*(W//2)*Cout)   lane-dense pooled output
        # xpad/hpad: f32 zero-haloed staging scratch; lhs1/lhs2: bf16 im2col LHS.

        def stage_padded(pad_ref, interior, c):
            # Zero only the 1-voxel halo (interior is fully overwritten below).
            # Done per step rather than once under program_id==0: the batch axis
            # is "parallel" (megacore), so program 0 may never execute on a given
            # core and init-once scratch would be stale there.
            pad_ref[0:1] = jnp.zeros((1, Hp, Wp * c), pad_ref.dtype)
            pad_ref[Dp - 1:Dp] = jnp.zeros((1, Hp, Wp * c), pad_ref.dtype)
            pad_ref[1:1 + D, 0:1, :] = jnp.zeros((D, 1, Wp * c), pad_ref.dtype)
            pad_ref[1:1 + D, Hp - 1:Hp, :] = jnp.zeros((D, 1, Wp * c), pad_ref.dtype)
            pad_ref[1:1 + D, 1:1 + H, 0:c] = jnp.zeros((D, H, c), pad_ref.dtype)
            pad_ref[1:1 + D, 1:1 + H, (W + 1) * c:(W + 2) * c] = jnp.zeros(
                (D, H, c), pad_ref.dtype)
            pad_ref[1:1 + D, 1:1 + H, c:(W + 1) * c] = interior

        def im2col(pad_ref, lhs_ref, c):
            # 9 (kd, kh) slabs over the full padded width; the kw taps live in the
            # width-structured weight, so the whole conv is ONE matmul with
            # K = 9 * Wp * c.  Staged through a bf16 VMEM scratch to bound vreg
            # live ranges and feed the MXU at full (bf16) rate.
            wc = Wp * c
            t = 0
            for kd in range(3):
                for kh in range(3):
                    lhs_ref[:, t * wc:(t + 1) * wc] = (
                        pad_ref[kd:kd + D, kh:kh + H, :]
                        .reshape(DH, wc).astype(lhs_ref.dtype))
                    t += 1

        xi = x_ref[...]                                          # (D, H, W*Cin)
        stage_padded(xpad_ref, xi, Cin)
        im2col(xpad_ref, lhs1_ref, Cin)

        # ---- main path conv #1 (BN1 scale pre-folded): one MXU matmul ----
        acc1 = jnp.dot(lhs1_ref[...], w1_ref[...],
                       preferred_element_type=jnp.float32)        # (DH, W*Cout)
        h1 = jnp.maximum(acc1 + t1_ref[...], 0.0)                 # shift + ReLU

        stage_padded(hpad_ref, h1.reshape(D, H, W * Cout), Cout)
        im2col(hpad_ref, lhs2_ref, Cout)
        # Residual 1x1x1 conv rides in the same matmul: raw input appended
        # behind the conv2 im2col columns (block-diagonal rows in w2_ref).
        lhs2_ref[:, K2:K2 + Kres] = xi.reshape(DH, Kres).astype(lhs2_ref.dtype)

        # ---- conv #2 + residual : ONE MXU matmul, K = 9*Wp*Cout + W*Cin ----
        acc2 = jnp.dot(lhs2_ref[...], w2_ref[...],
                       preferred_element_type=jnp.float32)        # (DH, W*Cout)

        # ---- ReLU + MaxPool3d(2, 2): pairwise maxes, ONE lane-dense store ----
        y = jnp.maximum(acc2 + t2_ref[...], 0.0).reshape(D, H, W * Cout)
        yh = jnp.concatenate(
            [jnp.maximum(y[:, 2 * i:2 * i + 1, :], y[:, 2 * i + 1:2 * i + 2, :])
             for i in range(H // 2)], axis=1)                     # (D, H//2, W*Cout)
        yd = jnp.concatenate(
            [jnp.maximum(yh[2 * i:2 * i + 1], yh[2 * i + 1:2 * i + 2])
             for i in range(D // 2)], axis=0)                     # (D//2, H//2, W*Cout)
        yw = jnp.concatenate(
            [jnp.maximum(yd[:, :, (2 * w) * Cout:(2 * w + 1) * Cout],
                         yd[:, :, (2 * w + 1) * Cout:(2 * w + 2) * Cout])
             for w in range(W // 2)], axis=-1)            # (D//2, H//2, (W//2)*Cout)
        # collapse (H//2, (W//2)*Cout) into the minor dim -> lane-dense output
        out_flat = jnp.concatenate([yw[:, hh, :] for hh in range(H // 2)],
                                   axis=-1)              # (D//2, (H//2)*(W//2)*Cout)
        o_ref[...] = out_flat.astype(o_ref.dtype)

    return kernel


@jax.jit
def res_conv_forward(x, w1, b1, g1, be1, m1, v1,
                     w2, b2, g2, be2, m2, v2, wr, br):
    """x: (N, D, H, W, Cin) f32 -> (N, D//2, H//2, W//2, Cout)."""
    N, D, H, W, Cin = x.shape
    Cout = w1.shape[-1]
    assert D % 2 == 0 and H % 2 == 0 and W % 2 == 0
    Dp, Hp, Wp = D + 2, H + 2, W + 2

    # fold conv bias + eval-mode BatchNorm into per-channel scale/shift
    s1 = g1 / jnp.sqrt(v1 + EPS)
    t1 = (b1 - m1) * s1 + be1
    s2 = g2 / jnp.sqrt(v2 + EPS)
    t2 = (b2 - m2) * s2 + be2

    # width-structured conv weights (built once, tiny): rows = (kd, kh, wp, cin),
    # cols = (w, cout);  value = w[kd, kh, wp - w, cin, cout] if 0 <= wp-w <= 2 else 0.
    # This folds the kw taps + the W zero-halo into a single big-K matmul.
    # The BN scales s1/s2 are folded into the output channels here.
    wsel = (jnp.arange(Wp)[None, :, None]
            == jnp.arange(W)[None, None, :] + jnp.arange(3)[:, None, None]
            ).astype(x.dtype)                                         # (3, Wp, W)
    w1s = jnp.einsum('abkic,kpw->abpiwc', w1 * s1, wsel).reshape(9 * Wp * Cin, W * Cout)
    w2s = jnp.einsum('abkic,kpw->abpiwc', w2 * s2, wsel).reshape(9 * Wp * Cout, W * Cout)
    # block-diagonal residual weight appended below the conv2 rows:
    # rows = (w, cin), cols = (w, cout)
    wrs = jnp.einsum('vw,ic->viwc', jnp.eye(W, dtype=wr.dtype), wr
                     ).reshape(W * Cin, W * Cout)
    w2rs = jnp.concatenate([w2s, wrs], axis=0)        # (9*Wp*Cout + W*Cin, W*Cout)

    # per-channel shifts broadcast over the merged (w, cout) minor dim;
    # the residual bias is folded into the conv2 shift.
    t1t = jnp.tile(t1, W)[None, :]
    t2t = jnp.tile(t2 + br, W)[None, :]

    # merge (W, Cin) into the minor dim: lane-dense blocks, free view reshape.
    # No wrapper-side jnp.pad: the halo is built in-kernel in VMEM scratch.
    x2 = x.reshape(N, D, H, W * Cin)

    def full(shape):
        return pl.BlockSpec(shape, lambda n, _s=shape: (0,) * len(_s))

    out = pl.pallas_call(
        _make_kernel(D, H, W, Cin, Cout),
        out_shape=jax.ShapeDtypeStruct(
            (N, D // 2, (H // 2) * (W // 2) * Cout), x.dtype),
        grid=(N,),
        in_specs=[
            pl.BlockSpec((None, D, H, W * Cin), lambda n: (n, 0, 0, 0)),
            full((9 * Wp * Cin, W * Cout)),
            full((1, W * Cout)),
            full((9 * Wp * Cout + W * Cin, W * Cout)),
            full((1, W * Cout)),
        ],
        out_specs=pl.BlockSpec((None, D // 2, (H // 2) * (W // 2) * Cout),
                               lambda n: (n, 0, 0)),
        scratch_shapes=[
            pltpu.VMEM((Dp, Hp, Wp * Cin), jnp.float32),                 # zero-haloed x
            pltpu.VMEM((Dp, Hp, Wp * Cout), jnp.float32),                # zero-haloed h1
            pltpu.VMEM((D * H, 9 * Wp * Cin), jnp.bfloat16),             # im2col LHS conv1
            pltpu.VMEM((D * H, 9 * Wp * Cout + W * Cin), jnp.bfloat16),  # im2col + residual LHS
        ],
        # batch elements are independent -> shard the grid across TensorCores
        # (v7x megacore); neutral on single-TC v5e/v6e.
        compiler_params=pltpu.CompilerParams(dimension_semantics=("parallel",)),
        # TODO(synk): for production-size volumes add a D-tile grid axis with a
        # 1-slice halo (smaller tiles on v7x's 64 MiB VMEM, larger + higher
        # vmem_limit_bytes on v5e/v6e) so blocks fit VMEM and the pipeline overlaps.
    )(x2, w1s.astype(jnp.bfloat16), t1t, w2rs.astype(jnp.bfloat16), t2t)

    # free view reshape back to NDHWC
    return out.reshape(N, D // 2, H // 2, W // 2, Cout)


def res_conv_reference(x, w1, b1, g1, be1, m1, v1,
                       w2, b2, g2, be2, m2, v2, wr, br):
    """Pure-JAX reference of the same (eval-mode) forward pass, NDHWC."""
    dn = ('NDHWC', 'DHWIO', 'NDHWC')

    def conv(inp, w, b):
        return lax.conv_general_dilated(inp, w, (1, 1, 1), 'SAME',
                                        dimension_numbers=dn) + b

    def bn(inp, g, be, m, v):
        return (inp - m) / jnp.sqrt(v + EPS) * g + be

    h = jnp.maximum(bn(conv(x, w1, b1), g1, be1, m1, v1), 0.0)
    h = bn(conv(h, w2, b2), g2, be2, m2, v2)
    r = conv(x, wr.reshape(1, 1, 1, *wr.shape), br)
    y = jnp.maximum(h + r, 0.0)
    N, D, H, W, C = y.shape
    return y.reshape(N, D // 2, 2, H // 2, 2, W // 2, 2, C).max(axis=(2, 4, 6))


if __name__ == "__main__":
    N, Cin, Cout, D, H, W = 2, 4, 8, 8, 8, 8
    ks = jax.random.split(jax.random.PRNGKey(0), 16)

    x = jax.random.normal(ks[0], (N, D, H, W, Cin), jnp.float32)
    w1 = 0.1 * jax.random.normal(ks[1], (3, 3, 3, Cin, Cout), jnp.float32)
    b1 = 0.1 * jax.random.normal(ks[2], (Cout,), jnp.float32)
    g1 = 1.0 + 0.1 * jax.random.normal(ks[3], (Cout,), jnp.float32)
    be1 = 0.1 * jax.random.normal(ks[4], (Cout,), jnp.float32)
    m1 = 0.1 * jax.random.normal(ks[5], (Cout,), jnp.float32)
    v1 = 1.0 + 0.5 * jax.random.uniform(ks[6], (Cout,), jnp.float32)
    w2 = 0.1 * jax.random.normal(ks[7], (3, 3, 3, Cout, Cout), jnp.float32)
    b2 = 0.1 * jax.random.normal(ks[8], (Cout,), jnp.float32)
    g2 = 1.0 + 0.1 * jax.random.normal(ks[9], (Cout,), jnp.float32)
    be2 = 0.1 * jax.random.normal(ks[10], (Cout,), jnp.float32)
    m2 = 0.1 * jax.random.normal(ks[11], (Cout,), jnp.float32)
    v2 = 1.0 + 0.5 * jax.random.uniform(ks[12], (Cout,), jnp.float32)
    wr = 0.1 * jax.random.normal(ks[13], (Cin, Cout), jnp.float32)
    br = 0.1 * jax.random.normal(ks[14], (Cout,), jnp.float32)

    args = (x, w1, b1, g1, be1, m1, v1, w2, b2, g2, be2, m2, v2, wr, br)

    out = jax.block_until_ready(res_conv_forward(*args))
    ref = jax.block_until_ready(res_conv_reference(*args))

    assert out.shape == (N, D // 2, H // 2, W // 2, Cout)
    # main-path + residual matmuls run in bf16 (f32 accumulation); loose tolerance.
    np.testing.assert_allclose(np.asarray(out), np.asarray(ref),
                               atol=5e-2, rtol=5e-2)
    print("KERNEL_OK")
</pallas_src>

<mosaic_0001>
module attributes {stable_mosaic.version = 11 : i64} {
  func.func @kernel(%arg0: i32, %arg1: memref<1x8x8x32xf32, #tpu.memory_space<vmem>>, %arg2: memref<360x64xbf16, #tpu.memory_space<vmem>>, %arg3: memref<1x64xf32, #tpu.memory_space<vmem>>, %arg4: memref<752x64xbf16, #tpu.memory_space<vmem>>, %arg5: memref<1x64xf32, #tpu.memory_space<vmem>>, %arg6: memref<1x4x128xf32, #tpu.memory_space<vmem>>, %arg7: memref<10x10x40xf32, #tpu.memory_space<vmem>>, %arg8: memref<10x10x80xf32, #tpu.memory_space<vmem>>, %arg9: memref<64x360xbf16, #tpu.memory_space<vmem>>, %arg10: memref<64x752xbf16, #tpu.memory_space<vmem>>) attributes {dimension_semantics = [#tpu.dimension_semantics<parallel>], iteration_bounds = array<i64: 2>, scalar_prefetch = 0 : i64, scratch_operands = 4 : i64, tpu.core_type = #tpu.core_type<tc>, window_params = [{transform_indices = @transform_0, window_bounds = array<i64: 1, 8, 8, 32>}, {pipeline_mode = #tpu.pipeline_mode<synchronous>, transform_indices = @transform_1, window_bounds = array<i64: 360, 64>}, {pipeline_mode = #tpu.pipeline_mode<synchronous>, transform_indices = @transform_2, window_bounds = array<i64: 1, 64>}, {pipeline_mode = #tpu.pipeline_mode<synchronous>, transform_indices = @transform_3, window_bounds = array<i64: 752, 64>}, {pipeline_mode = #tpu.pipeline_mode<synchronous>, transform_indices = @transform_4, window_bounds = array<i64: 1, 64>}, {transform_indices = @transform_5, window_bounds = array<i64: 1, 4, 128>}]} {
    %c0 = arith.constant 0 : index
    %c0_0 = arith.constant 0 : index
    %c0_1 = arith.constant 0 : index
    %c0_2 = arith.constant 0 : index
    %0 = vector.load %arg1[%c0, %c0_0, %c0_1, %c0_2] : memref<1x8x8x32xf32, #tpu.memory_space<vmem>>, vector<1x8x8x32xf32>
    %1 = vector.shape_cast %0 : vector<1x8x8x32xf32> to vector<8x8x32xf32>
    %cst = arith.constant 0.000000e+00 : f32
    %2 = vector.broadcast %cst : f32 to vector<1x10x40xf32>
    %c0_3 = arith.constant 0 : index
    %c0_4 = arith.constant 0 : index
    %c0_5 = arith.constant 0 : index
    %3 = vector.load %arg7[%c0_3, %c0_4, %c0_5] : memref<10x10x40xf32, #tpu.memory_space<vmem>>, vector<1x10x40xf32>
    tpu.vector_store %arg7[%c0_3, %c0_4, %c0_5], %2 {strides = array<i32>} : memref<10x10x40xf32, #tpu.memory_space<vmem>>, vector<1x10x40xf32>,
    %cst_6 = arith.constant 0.000000e+00 : f32
    %4 = vector.broadcast %cst_6 : f32 to vector<1x10x40xf32>
    %c9 = arith.constant 9 : index
    %c0_7 = arith.constant 0 : index
    %c0_8 = arith.constant 0 : index
    %5 = vector.load %arg7[%c9, %c0_7, %c0_8] : memref<10x10x40xf32, #tpu.memory_space<vmem>>, vector<1x10x40xf32>
    tpu.vector_store %arg7[%c9, %c0_7, %c0_8], %4 {strides = array<i32>} : memref<10x10x40xf32, #tpu.memory_space<vmem>>, vector<1x10x40xf32>,
    %cst_9 = arith.constant 0.000000e+00 : f32
    %6 = vector.broadcast %cst_9 : f32 to vector<8x1x40xf32>
    %c1 = arith.constant 1 : index
    %c0_10 = arith.constant 0 : index
    %c0_11 = arith.constant 0 : index
    %7 = vector.load %arg7[%c1, %c0_10, %c0_11] : memref<10x10x40xf32, #tpu.memory_space<vmem>>, vector<8x1x40xf32>
    tpu.vector_store %arg7[%c1, %c0_10, %c0_11], %6 {strides = array<i32>} : memref<10x10x40xf32, #tpu.memory_space<vmem>>, vector<8x1x40xf32>,
    %cst_12 = arith.constant 0.000000e+00 : f32
    %8 = vector.broadcast %cst_12 : f32 to vector<8x1x40xf32>
    %c1_13 = arith.constant 1 : index
    %c9_14 = arith.constant 9 : index
    %c0_15 = arith.constant 0 : index
    %9 = vector.load %arg7[%c1_13, %c9_14, %c0_15] : memref<10x10x40xf32, #tpu.memory_space<vmem>>, vector<8x1x40xf32>
    tpu.vector_store %arg7[%c1_13, %c9_14, %c0_15], %8 {strides = array<i32>} : memref<10x10x40xf32, #tpu.memory_space<vmem>>, vector<8x1x40xf32>,
    %cst_16 = arith.constant 0.000000e+00 : f32
    %10 = vector.broadcast %cst_16 : f32 to vector<8x8x4xf32>
    %c1_17 = arith.constant 1 : index
    %c1_18 = arith.constant 1 : index
    %c0_19 = arith.constant 0 : index
    %11 = vector.load %arg7[%c1_17, %c1_18, %c0_19] : memref<10x10x40xf32, #tpu.memory_space<vmem>>, vector<8x8x4xf32>
    tpu.vector_store %arg7[%c1_17, %c1_18, %c0_19], %10 {strides = array<i32>} : memref<10x10x40xf32, #tpu.memory_space<vmem>>, vector<8x8x4xf32>,
    %cst_20 = arith.constant 0.000000e+00 : f32
    %12 = vector.broadcast %cst_20 : f32 to vector<8x8x4xf32>
    %c1_21 = arith.constant 1 : index
    %c1_22 = arith.constant 1 : index
    %c36 = arith.constant 36 : index
    %13 = vector.load %arg7[%c1_21, %c1_22, %c36] : memref<10x10x40xf32, #tpu.memory_space<vmem>>, vector<8x8x4xf32>
    tpu.vector_store %arg7[%c1_21, %c1_22, %c36], %12 {strides = array<i32>} : memref<10x10x40xf32, #tpu.memory_space<vmem>>, vector<8x8x4xf32>,
    %c1_23 = arith.constant 1 : index
    %c1_24 = arith.constant 1 : index
    %c4 = arith.constant 4 : index
    %14 = vector.load %arg7[%c1_23, %c1_24, %c4] : memref<10x10x40xf32, #tpu.memory_space<vmem>>, vector<8x8x32xf32>
    tpu.vector_store %arg7[%c1_23, %c1_24, %c4], %1 {strides = array<i32>} : memref<10x10x40xf32, #tpu.memory_space<vmem>>, vector<8x8x32xf32>,
    %c0_25 = arith.constant 0 : index
    %c0_26 = arith.constant 0 : index
    %c0_27 = arith.constant 0 : index
    %15 = vector.load %arg7[%c0_25, %c0_26, %c0_27] : memref<10x10x40xf32, #tpu.memory_space<vmem>>, vector<8x8x40xf32>
    %16 = vector.shape_cast %15 : vector<8x8x40xf32> to vector<64x40xf32>
    %17 = arith.truncf %16 : vector<64x40xf32> to vector<64x40xbf16>
    %c0_28 = arith.constant 0 : index
    %c0_29 = arith.constant 0 : index
    %18 = vector.load %arg9[%c0_28, %c0_29] : memref<64x360xbf16, #tpu.memory_space<vmem>>, vector<64x40xbf16>
    tpu.vector_store %arg9[%c0_28, %c0_29], %17 {strides = array<i32>} : memref<64x360xbf16, #tpu.memory_space<vmem>>, vector<64x40xbf16>,
    %c0_30 = arith.constant 0 : index
    %c1_31 = arith.constant 1 : index
    %c0_32 = arith.constant 0 : index
    %19 = vector.load %arg7[%c0_30, %c1_31, %c0_32] : memref<10x10x40xf32, #tpu.memory_space<vmem>>, vector<8x8x40xf32>
    %20 = vector.shape_cast %19 : vector<8x8x40xf32> to vector<64x40xf32>
    %21 = arith.truncf %20 : vector<64x40xf32> to vector<64x40xbf16>
    %c0_33 = arith.constant 0 : index
    %c40 = arith.constant 40 : index
    %22 = vector.load %arg9[%c0_33, %c40] : memref<64x360xbf16, #tpu.memory_space<vmem>>, vector<64x40xbf16>
    tpu.vector_store %arg9[%c0_33, %c40], %21 {strides = array<i32>} : memref<64x360xbf16, #tpu.memory_space<vmem>>, vector<64x40xbf16>,
    %c0_34 = arith.constant 0 : index
    %c2 = arith.constant 2 : index
    %c0_35 = arith.constant 0 : index
    %23 = vector.load %arg7[%c0_34, %c2, %c0_35] : memref<10x10x40xf32, #tpu.memory_space<vmem>>, vector<8x8x40xf32>
    %24 = vector.shape_cast %23 : vector<8x8x40xf32> to vector<64x40xf32>
    %25 = arith.truncf %24 : vector<64x40xf32> to vector<64x40xbf16>
    %c0_36 = arith.constant 0 : index
    %c80 = arith.constant 80 : index
    %26 = vector.load %arg9[%c0_36, %c80] : memref<64x360xbf16, #tpu.memory_space<vmem>>, vector<64x40xbf16>
    tpu.vector_store %arg9[%c0_36, %c80], %25 {strides = array<i32>} : memref<64x360xbf16, #tpu.memory_space<vmem>>, vector<64x40xbf16>,
    %c1_37 = arith.constant 1 : index
    %c0_38 = arith.constant 0 : index
    %c0_39 = arith.constant 0 : index
    %27 = vector.load %arg7[%c1_37, %c0_38, %c0_39] : memref<10x10x40xf32, #tpu.memory_space<vmem>>, vector<8x8x40xf32>
    %28 = vector.shape_cast %27 : vector<8x8x40xf32> to vector<64x40xf32>
    %29 = arith.truncf %28 : vector<64x40xf32> to vector<64x40xbf16>
    %c0_40 = arith.constant 0 : index
    %c120 = arith.constant 120 : index
    %30 = vector.load %arg9[%c0_40, %c120] : memref<64x360xbf16, #tpu.memory_space<vmem>>, vector<64x40xbf16>
    tpu.vector_store %arg9[%c0_40, %c120], %29 {strides = array<i32>} : memref<64x360xbf16, #tpu.memory_space<vmem>>, vector<64x40xbf16>,
    %c1_41 = arith.constant 1 : index
    %c1_42 = arith.constant 1 : index
    %c0_43 = arith.constant 0 : index
    %31 = vector.load %arg7[%c1_41, %c1_42, %c0_43] : memref<10x10x40xf32, #tpu.memory_space<vmem>>, vector<8x8x40xf32>
    %32 = vector.shape_cast %31 : vector<8x8x40xf32> to vector<64x40xf32>
    %33 = arith.truncf %32 : vector<64x40xf32> to vector<64x40xbf16>
    %c0_44 = arith.constant 0 : index
    %c160 = arith.constant 160 : index
    %34 = vector.load %arg9[%c0_44, %c160] : memref<64x360xbf16, #tpu.memory_space<vmem>>, vector<64x40xbf16>
    tpu.vector_store %arg9[%c0_44, %c160], %33 {strides = array<i32>} : memref<64x360xbf16, #tpu.memory_space<vmem>>, vector<64x40xbf16>,
    %c1_45 = arith.constant 1 : index
    %c2_46 = arith.constant 2 : index
    %c0_47 = arith.constant 0 : index
    %35 = vector.load %arg7[%c1_45, %c2_46, %c0_47] : memref<10x10x40xf32, #tpu.memory_space<vmem>>, vector<8x8x40xf32>
    %36 = vector.shape_cast %35 : vector<8x8x40xf32> to vector<64x40xf32>
    %37 = arith.truncf %36 : vector<64x40xf32> to vector<64x40xbf16>
    %c0_48 = arith.constant 0 : index
    %c200 = arith.constant 200 : index
    %38 = vector.load %arg9[%c0_48, %c200] : memref<64x360xbf16, #tpu.memory_space<vmem>>, vector<64x40xbf16>
    tpu.vector_store %arg9[%c0_48, %c200], %37 {strides = array<i32>} : memref<64x360xbf16, #tpu.memory_space<vmem>>, vector<64x40xbf16>,
    %c2_49 = arith.constant 2 : index
    %c0_50 = arith.constant 0 : index
    %c0_51 = arith.constant 0 : index
    %39 = vector.load %arg7[%c2_49, %c0_50, %c0_51] : memref<10x10x40xf32, #tpu.memory_space<vmem>>, vector<8x8x40xf32>
    %40 = vector.shape_cast %39 : vector<8x8x40xf32> to vector<64x40xf32>
    %41 = arith.truncf %40 : vector<64x40xf32> to vector<64x40xbf16>
    %c0_52 = arith.constant 0 : index
    %c240 = arith.constant 240 : index
    %42 = vector.load %arg9[%c0_52, %c240] : memref<64x360xbf16, #tpu.memory_space<vmem>>, vector<64x40xbf16>
    tpu.vector_store %arg9[%c0_52, %c240], %41 {strides = array<i32>} : memref<64x360xbf16, #tpu.memory_space<vmem>>, vector<64x40xbf16>,
    %c2_53 = arith.constant 2 : index
    %c1_54 = arith.constant 1 : index
    %c0_55 = arith.constant 0 : index
    %43 = vector.load %arg7[%c2_53, %c1_54, %c0_55] : memref<10x10x40xf32, #tpu.memory_space<vmem>>, vector<8x8x40xf32>
    %44 = vector.shape_cast %43 : vector<8x8x40xf32> to vector<64x40xf32>
    %45 = arith.truncf %44 : vector<64x40xf32> to vector<64x40xbf16>
    %c0_56 = arith.constant 0 : index
    %c280 = arith.constant 280 : index
    %46 = vector.load %arg9[%c0_56, %c280] : memref<64x360xbf16, #tpu.memory_space<vmem>>, vector<64x40xbf16>
    tpu.vector_store %arg9[%c0_56, %c280], %45 {strides = array<i32>} : memref<64x360xbf16, #tpu.memory_space<vmem>>, vector<64x40xbf16>,
    %c2_57 = arith.constant 2 : index
    %c2_58 = arith.constant 2 : index
    %c0_59 = arith.constant 0 : index
    %47 = vector.load %arg7[%c2_57, %c2_58, %c0_59] : memref<10x10x40xf32, #tpu.memory_space<vmem>>, vector<8x8x40xf32>
    %48 = vector.shape_cast %47 : vector<8x8x40xf32> to vector<64x40xf32>
    %49 = arith.truncf %48 : vector<64x40xf32> to vector<64x40xbf16>
    %c0_60 = arith.constant 0 : index
    %c320 = arith.constant 320 : index
    %50 = vector.load %arg9[%c0_60, %c320] : memref<64x360xbf16, #tpu.memory_space<vmem>>, vector<64x40xbf16>
    tpu.vector_store %arg9[%c0_60, %c320], %49 {strides = array<i32>} : memref<64x360xbf16, #tpu.memory_space<vmem>>, vector<64x40xbf16>,
    %c0_61 = arith.constant 0 : index
    %c0_62 = arith.constant 0 : index
    %51 = vector.load %arg9[%c0_61, %c0_62] : memref<64x360xbf16, #tpu.memory_space<vmem>>, vector<64x360xbf16>
    %c0_63 = arith.constant 0 : index
    %c0_64 = arith.constant 0 : index
    %52 = vector.load %arg2[%c0_63, %c0_64] : memref<360x64xbf16, #tpu.memory_space<vmem>>, vector<360x64xbf16>
    %cst_65 = arith.constant dense<0.000000e+00> : vector<64x64xf32>
    %53 = tpu.matmul %51, %52, %cst_65 {dimension_numbers = #tpu.dot_dimension_numbers<[1], [0], [0], [1], [0, 0, 1, 1], [], []>} : vector<64x360xbf16>, vector<360x64xbf16>, vector<64x64xf32> -> vector<64x64xf32>
    %c0_66 = arith.constant 0 : index
    %c0_67 = arith.constant 0 : index
    %54 = vector.load %arg3[%c0_66, %c0_67] : memref<1x64xf32, #tpu.memory_space<vmem>>, vector<1x64xf32>
    %55 = vector.broadcast %54 : vector<1x64xf32> to vector<64x64xf32>
    %56 = arith.addf %53, %55 : vector<64x64xf32>
    %cst_68 = arith.constant 0.000000e+00 : f32
    %57 = vector.broadcast %cst_68 : f32 to vector<64x64xf32>
    %58 = arith.maximumf %56, %57 : vector<64x64xf32>
    %59 = vector.shape_cast %58 : vector<64x64xf32> to vector<8x8x64xf32>
    %cst_69 = arith.constant 0.000000e+00 : f32
    %60 = vector.broadcast %cst_69 : f32 to vector<1x10x80xf32>
    %c0_70 = arith.constant 0 : index
    %c0_71 = arith.constant 0 : index
    %c0_72 = arith.constant 0 : index
    %61 = vector.load %arg8[%c0_70, %c0_71, %c0_72] : memref<10x10x80xf32, #tpu.memory_space<vmem>>, vector<1x10x80xf32>
    tpu.vector_store %arg8[%c0_70, %c0_71, %c0_72], %60 {strides = array<i32>} : memref<10x10x80xf32, #tpu.memory_space<vmem>>, vector<1x10x80xf32>,
    %cst_73 = arith.constant 0.000000e+00 : f32
    %62 = vector.broadcast %cst_73 : f32 to vector<1x10x80xf32>
    %c9_74 = arith.constant 9 : index
    %c0_75 = arith.constant 0 : index
    %c0_76 = arith.constant 0 : index
    %63 = vector.load %arg8[%c9_74, %c0_75, %c0_76] : memref<10x10x80xf32, #tpu.memory_space<vmem>>, vector<1x10x80xf32>
    tpu.vector_store %arg8[%c9_74, %c0_75, %c0_76], %62 {strides = array<i32>} : memref<10x10x80xf32, #tpu.memory_space<vmem>>, vector<1x10x80xf32>,
    %cst_77 = arith.constant 0.000000e+00 : f32
    %64 = vector.broadcast %cst_77 : f32 to vector<8x1x80xf32>
    %c1_78 = arith.constant 1 : index
    %c0_79 = arith.constant 0 : index
    %c0_80 = arith.constant 0 : index
    %65 = vector.load %arg8[%c1_78, %c0_79, %c0_80] : memref<10x10x80xf32, #tpu.memory_space<vmem>>, vector<8x1x80xf32>
    tpu.vector_store %arg8[%c1_78, %c0_79, %c0_80], %64 {strides = array<i32>} : memref<10x10x80xf32, #tpu.memory_space<vmem>>, vector<8x1x80xf32>,
    %cst_81 = arith.constant 0.000000e+00 : f32
    %66 = vector.broadcast %cst_81 : f32 to vector<8x1x80xf32>
    %c1_82 = arith.constant 1 : index
    %c9_83 = arith.constant 9 : index
    %c0_84 = arith.constant 0 : index
    %67 = vector.load %arg8[%c1_82, %c9_83, %c0_84] : memref<10x10x80xf32, #tpu.memory_space<vmem>>, vector<8x1x80xf32>
    tpu.vector_store %arg8[%c1_82, %c9_83, %c0_84], %66 {strides = array<i32>} : memref<10x10x80xf32, #tpu.memory_space<vmem>>, vector<8x1x80xf32>,
    %cst_85 = arith.constant 0.000000e+00 : f32
    %68 = vector.broadcast %cst_85 : f32 to vector<8x8x8xf32>
    %c1_86 = arith.constant 1 : index
    %c1_87 = arith.constant 1 : index
    %c0_88 = arith.constant 0 : index
    %69 = vector.load %arg8[%c1_86, %c1_87, %c0_88] : memref<10x10x80xf32, #tpu.memory_space<vmem>>, vector<8x8x8xf32>
    tpu.vector_store %arg8[%c1_86, %c1_87, %c0_88], %68 {strides = array<i32>} : memref<10x10x80xf32, #tpu.memory_space<vmem>>, vector<8x8x8xf32>,
    %cst_89 = arith.constant 0.000000e+00 : f32
    %70 = vector.broadcast %cst_89 : f32 to vector<8x8x8xf32>
    %c1_90 = arith.constant 1 : index
    %c1_91 = arith.constant 1 : index
    %c72 = arith.constant 72 : index
    %71 = vector.load %arg8[%c1_90, %c1_91, %c72] : memref<10x10x80xf32, #tpu.memory_space<vmem>>, vector<8x8x8xf32>
    tpu.vector_store %arg8[%c1_90, %c1_91, %c72], %70 {strides = array<i32>} : memref<10x10x80xf32, #tpu.memory_space<vmem>>, vector<8x8x8xf32>,
    %c1_92 = arith.constant 1 : index
    %c1_93 = arith.constant 1 : index
    %c8 = arith.constant 8 : index
    %72 = vector.load %arg8[%c1_92, %c1_93, %c8] : memref<10x10x80xf32, #tpu.memory_space<vmem>>, vector<8x8x64xf32>
    tpu.vector_store %arg8[%c1_92, %c1_93, %c8], %59 {strides = array<i32>} : memref<10x10x80xf32, #tpu.memory_space<vmem>>, vector<8x8x64xf32>,
    %c0_94 = arith.constant 0 : index
    %c0_95 = arith.constant 0 : index
    %c0_96 = arith.constant 0 : index
    %73 = vector.load %arg8[%c0_94, %c0_95, %c0_96] : memref<10x10x80xf32, #tpu.memory_space<vmem>>, vector<8x8x80xf32>
    %74 = vector.shape_cast %73 : vector<8x8x80xf32> to vector<64x80xf32>
    %75 = arith.truncf %74 : vector<64x80xf32> to vector<64x80xbf16>
    %c0_97 = arith.constant 0 : index
    %c0_98 = arith.constant 0 : index
    %76 = vector.load %arg10[%c0_97, %c0_98] : memref<64x752xbf16, #tpu.memory_space<vmem>>, vector<64x80xbf16>
    tpu.vector_store %arg10[%c0_97, %c0_98], %75 {strides = array<i32>} : memref<64x752xbf16, #tpu.memory_space<vmem>>, vector<64x80xbf16>,
    %c0_99 = arith.constant 0 : index
    %c1_100 = arith.constant 1 : index
    %c0_101 = arith.constant 0 : index
    %77 = vector.load %arg8[%c0_99, %c1_100, %c0_101] : memref<10x10x80xf32, #tpu.memory_space<vmem>>, vector<8x8x80xf32>
    %78 = vector.shape_cast %77 : vector<8x8x80xf32> to vector<64x80xf32>
    %79 = arith.truncf %78 : vector<64x80xf32> to vector<64x80xbf16>
    %c0_102 = arith.constant 0 : index
    %c80_103 = arith.constant 80 : index
    %80 = vector.load %arg10[%c0_102, %c80_103] : memref<64x752xbf16, #tpu.memory_space<vmem>>, vector<64x80xbf16>
    tpu.vector_store %arg10[%c0_102, %c80_103], %79 {strides = array<i32>} : memref<64x752xbf16, #tpu.memory_space<vmem>>, vector<64x80xbf16>,
    %c0_104 = arith.constant 0 : index
    %c2_105 = arith.constant 2 : index
    %c0_106 = arith.constant 0 : index
    %81 = vector.load %arg8[%c0_104, %c2_105, %c0_106] : memref<10x10x80xf32, #tpu.memory_space<vmem>>, vector<8x8x80xf32>
    %82 = vector.shape_cast %81 : vector<8x8x80xf32> to vector<64x80xf32>
    %83 = arith.truncf %82 : vector<64x80xf32> to vector<64x80xbf16>
    %c0_107 = arith.constant 0 : index
    %c160_108 = arith.constant 160 : index
    %84 = vector.load %arg10[%c0_107, %c160_108] : memref<64x752xbf16, #tpu.memory_space<vmem>>, vector<64x80xbf16>
    tpu.vector_store %arg10[%c0_107, %c160_108], %83 {strides = array<i32>} : memref<64x752xbf16, #tpu.memory_space<vmem>>, vector<64x80xbf16>,
    %c1_109 = arith.constant 1 : index
    %c0_110 = arith.constant 0 : index
    %c0_111 = arith.constant 0 : index
    %85 = vector.load %arg8[%c1_109, %c0_110, %c0_111] : memref<10x10x80xf32, #tpu.memory_space<vmem>>, vector<8x8x80xf32>
    %86 = vector.shape_cast %85 : vector<8x8x80xf32> to vector<64x80xf32>
    %87 = arith.truncf %86 : vector<64x80xf32> to vector<64x80xbf16>
    %c0_112 = arith.constant 0 : index
    %c240_113 = arith.constant 240 : index
    %88 = vector.load %arg10[%c0_112, %c240_113] : memref<64x752xbf16, #tpu.memory_space<vmem>>, vector<64x80xbf16>
    tpu.vector_store %arg10[%c0_112, %c240_113], %87 {strides = array<i32>} : memref<64x752xbf16, #tpu.memory_space<vmem>>, vector<64x80xbf16>,
    %c1_114 = arith.constant 1 : index
    %c1_115 = arith.constant 1 : index
    %c0_116 = arith.constant 0 : index
    %89 = vector.load %arg8[%c1_114, %c1_115, %c0_116] : memref<10x10x80xf32, #tpu.memory_space<vmem>>, vector<8x8x80xf32>
    %90 = vector.shape_cast %89 : vector<8x8x80xf32> to vector<64x80xf32>
    %91 = arith.truncf %90 : vector<64x80xf32> to vector<64x80xbf16>
    %c0_117 = arith.constant 0 : index
    %c320_118 = arith.constant 320 : index
    %92 = vector.load %arg10[%c0_117, %c320_118] : memref<64x752xbf16, #tpu.memory_space<vmem>>, vector<64x80xbf16>
    tpu.vector_store %arg10[%c0_117, %c320_118], %91 {strides = array<i32>} : memref<64x752xbf16, #tpu.memory_space<vmem>>, vector<64x80xbf16>,
    %c1_119 = arith.constant 1 : index
    %c2_120 = arith.constant 2 : index
    %c0_121 = arith.constant 0 : index
    %93 = vector.load %arg8[%c1_119, %c2_120, %c0_121] : memref<10x10x80xf32, #tpu.memory_space<vmem>>, vector<8x8x80xf32>
    %94 = vector.shape_cast %93 : vector<8x8x80xf32> to vector<64x80xf32>
    %95 = arith.truncf %94 : vector<64x80xf32> to vector<64x80xbf16>
    %c0_122 = arith.constant 0 : index
    %c400 = arith.constant 400 : index
    %96 = vector.load %arg10[%c0_122, %c400] : memref<64x752xbf16, #tpu.memory_space<vmem>>, vector<64x80xbf16>
    tpu.vector_store %arg10[%c0_122, %c400], %95 {strides = array<i32>} : memref<64x752xbf16, #tpu.memory_space<vmem>>, vector<64x80xbf16>,
    %c2_123 = arith.constant 2 : index
    %c0_124 = arith.constant 0 : index
    %c0_125 = arith.constant 0 : index
    %97 = vector.load %arg8[%c2_123, %c0_124, %c0_125] : memref<10x10x80xf32, #tpu.memory_space<vmem>>, vector<8x8x80xf32>
    %98 = vector.shape_cast %97 : vector<8x8x80xf32> to vector<64x80xf32>
    %99 = arith.truncf %98 : vector<64x80xf32> to vector<64x80xbf16>
    %c0_126 = arith.constant 0 : index
    %c480 = arith.constant 480 : index
    %100 = vector.load %arg10[%c0_126, %c480] : memref<64x752xbf16, #tpu.memory_space<vmem>>, vector<64x80xbf16>
    tpu.vector_store %arg10[%c0_126, %c480], %99 {strides = array<i32>} : memref<64x752xbf16, #tpu.memory_space<vmem>>, vector<64x80xbf16>,
    %c2_127 = arith.constant 2 : index
    %c1_128 = arith.constant 1 : index
    %c0_129 = arith.constant 0 : index
    %101 = vector.load %arg8[%c2_127, %c1_128, %c0_129] : memref<10x10x80xf32, #tpu.memory_space<vmem>>, vector<8x8x80xf32>
    %102 = vector.shape_cast %101 : vector<8x8x80xf32> to vector<64x80xf32>
    %103 = arith.truncf %102 : vector<64x80xf32> to vector<64x80xbf16>
    %c0_130 = arith.constant 0 : index
    %c560 = arith.constant 560 : index
    %104 = vector.load %arg10[%c0_130, %c560] : memref<64x752xbf16, #tpu.memory_space<vmem>>, vector<64x80xbf16>
    tpu.vector_store %arg10[%c0_130, %c560], %103 {strides = array<i32>} : memref<64x752xbf16, #tpu.memory_space<vmem>>, vector<64x80xbf16>,
    %c2_131 = arith.constant 2 : index
    %c2_132 = arith.constant 2 : index
    %c0_133 = arith.constant 0 : index
    %105 = vector.load %arg8[%c2_131, %c2_132, %c0_133] : memref<10x10x80xf32, #tpu.memory_space<vmem>>, vector<8x8x80xf32>
    %106 = vector.shape_cast %105 : vector<8x8x80xf32> to vector<64x80xf32>
    %107 = arith.truncf %106 : vector<64x80xf32> to vector<64x80xbf16>
    %c0_134 = arith.constant 0 : index
    %c640 = arith.constant 640 : index
    %108 = vector.load %arg10[%c0_134, %c640] : memref<64x752xbf16, #tpu.memory_space<vmem>>, vector<64x80xbf16>
    tpu.vector_store %arg10[%c0_134, %c640], %107 {strides = array<i32>} : memref<64x752xbf16, #tpu.memory_space<vmem>>, vector<64x80xbf16>,
    %109 = vector.shape_cast %1 : vector<8x8x32xf32> to vector<64x32xf32>
    %110 = arith.truncf %109 : vector<64x32xf32> to vector<64x32xbf16>
    %c0_135 = arith.constant 0 : index
    %c720 = arith.constant 720 : index
    %111 = vector.load %arg10[%c0_135, %c720] : memref<64x752xbf16, #tpu.memory_space<vmem>>, vector<64x32xbf16>
    tpu.vector_store %arg10[%c0_135, %c720], %110 {strides = array<i32>} : memref<64x752xbf16, #tpu.memory_space<vmem>>, vector<64x32xbf16>,
    %c0_136 = arith.constant 0 : index
    %c0_137 = arith.constant 0 : index
    %112 = vector.load %arg10[%c0_136, %c0_137] : memref<64x752xbf16, #tpu.memory_space<vmem>>, vector<64x752xbf16>
    %c0_138 = arith.constant 0 : index
    %c0_139 = arith.constant 0 : index
    %113 = vector.load %arg4[%c0_138, %c0_139] : memref<752x64xbf16, #tpu.memory_space<vmem>>, vector<752x64xbf16>
    %cst_140 = arith.constant dense<0.000000e+00> : vector<64x64xf32>
    %114 = tpu.matmul %112, %113, %cst_140 {dimension_numbers = #tpu.dot_dimension_numbers<[1], [0], [0], [1], [0, 0, 1, 1], [], []>} : vector<64x752xbf16>, vector<752x64xbf16>, vector<64x64xf32> -> vector<64x64xf32>
    %c0_141 = arith.constant 0 : index
    %c0_142 = arith.constant 0 : index
    %115 = vector.load %arg5[%c0_141, %c0_142] : memref<1x64xf32, #tpu.memory_space<vmem>>, vector<1x64xf32>
    %116 = vector.broadcast %115 : vector<1x64xf32> to vector<64x64xf32>
    %117 = arith.addf %114, %116 : vector<64x64xf32>
    %cst_143 = arith.constant 0.000000e+00 : f32
    %118 = vector.broadcast %cst_143 : f32 to vector<64x64xf32>
    %119 = arith.maximumf %117, %118 : vector<64x64xf32>
    %120 = vector.shape_cast %119 : vector<64x64xf32> to vector<8x8x64xf32>
    %121 = vector.extract_strided_slice %120 {offsets = [0, 0, 0], sizes = [8, 1, 64], strides = [1, 1, 1]} : vector<8x8x64xf32> to vector<8x1x64xf32>
    %122 = vector.extract_strided_slice %120 {offsets = [0, 1, 0], sizes = [8, 1, 64], strides = [1, 1, 1]} : vector<8x8x64xf32> to vector<8x1x64xf32>
    %123 = arith.maximumf %121, %122 : vector<8x1x64xf32>
    %124 = vector.extract_strided_slice %120 {offsets = [0, 2, 0], sizes = [8, 1, 64], strides = [1, 1, 1]} : vector<8x8x64xf32> to vector<8x1x64xf32>
    %125 = vector.extract_strided_slice %120 {offsets = [0, 3, 0], sizes = [8, 1, 64], strides = [1, 1, 1]} : vector<8x8x64xf32> to vector<8x1x64xf32>
    %126 = arith.maximumf %124, %125 : vector<8x1x64xf32>
    %127 = vector.extract_strided_slice %120 {offsets = [0, 4, 0], sizes = [8, 1, 64], strides = [1, 1, 1]} : vector<8x8x64xf32> to vector<8x1x64xf32>
    %128 = vector.extract_strided_slice %120 {offsets = [0, 5, 0], sizes = [8, 1, 64], strides = [1, 1, 1]} : vector<8x8x64xf32> to vector<8x1x64xf32>
    %129 = arith.maximumf %127, %128 : vector<8x1x64xf32>
    %130 = vector.extract_strided_slice %120 {offsets = [0, 6, 0], sizes = [8, 1, 64], strides = [1, 1, 1]} : vector<8x8x64xf32> to vector<8x1x64xf32>
    %131 = vector.extract_strided_slice %120 {offsets = [0, 7, 0], sizes = [8, 1, 64], strides = [1, 1, 1]} : vector<8x8x64xf32> to vector<8x1x64xf32>
    %132 = arith.maximumf %130, %131 : vector<8x1x64xf32>
    %133 = tpu.concatenate %123, %126, %129, %132 in 1 : vector<8x1x64xf32>, vector<8x1x64xf32>, vector<8x1x64xf32>, vector<8x1x64xf32> -> vector<8x4x64xf32>
    %134 = vector.extract_strided_slice %133 {offsets = [0, 0, 0], sizes = [1, 4, 64], strides = [1, 1, 1]} : vector<8x4x64xf32> to vector<1x4x64xf32>
    %135 = vector.extract_strided_slice %133 {offsets = [1, 0, 0], sizes = [1, 4, 64], strides = [1, 1, 1]} : vector<8x4x64xf32> to vector<1x4x64xf32>
    %136 = arith.maximumf %134, %135 : vector<1x4x64xf32>
    %137 = vector.extract_strided_slice %133 {offsets = [2, 0, 0], sizes = [1, 4, 64], strides = [1, 1, 1]} : vector<8x4x64xf32> to vector<1x4x64xf32>
    %138 = vector.extract_strided_slice %133 {offsets = [3, 0, 0], sizes = [1, 4, 64], strides = [1, 1, 1]} : vector<8x4x64xf32> to vector<1x4x64xf32>
    %139 = arith.maximumf %137, %138 : vector<1x4x64xf32>
    %140 = vector.extract_strided_slice %133 {offsets = [4, 0, 0], sizes = [1, 4, 64], strides = [1, 1, 1]} : vector<8x4x64xf32> to vector<1x4x64xf32>
    %141 = vector.extract_strided_slice %133 {offsets = [5, 0, 0], sizes = [1, 4, 64], strides = [1, 1, 1]} : vector<8x4x64xf32> to vector<1x4x64xf32>
    %142 = arith.maximumf %140, %141 : vector<1x4x64xf32>
    %143 = vector.extract_strided_slice %133 {offsets = [6, 0, 0], sizes = [1, 4, 64], strides = [1, 1, 1]} : vector<8x4x64xf32> to vector<1x4x64xf32>
    %144 = vector.extract_strided_slice %133 {offsets = [7, 0, 0], sizes = [1, 4, 64], strides = [1, 1, 1]} : vector<8x4x64xf32> to vector<1x4x64xf32>
    %145 = arith.maximumf %143, %144 : vector<1x4x64xf32>
    %146 = tpu.concatenate %136, %139, %142, %145 in 0 : vector<1x4x64xf32>, vector<1x4x64xf32>, vector<1x4x64xf32>, vector<1x4x64xf32> -> vector<4x4x64xf32>
    %147 = vector.extract_strided_slice %146 {offsets = [0, 0, 0], sizes = [4, 4, 8], strides = [1, 1, 1]} : vector<4x4x64xf32> to vector<4x4x8xf32>
    %148 = vector.extract_strided_slice %146 {offsets = [0, 0, 8], sizes = [4, 4, 8], strides = [1, 1, 1]} : vector<4x4x64xf32> to vector<4x4x8xf32>
    %149 = arith.maximumf %147, %148 : vector<4x4x8xf32>
    %150 = vector.extract_strided_slice %146 {offsets = [0, 0, 16], sizes = [4, 4, 8], strides = [1, 1, 1]} : vector<4x4x64xf32> to vector<4x4x8xf32>
    %151 = vector.extract_strided_slice %146 {offsets = [0, 0, 24], sizes = [4, 4, 8], strides = [1, 1, 1]} : vector<4x4x64xf32> to vector<4x4x8xf32>
    %152 = arith.maximumf %150, %151 : vector<4x4x8xf32>
    %153 = vector.extract_strided_slice %146 {offsets = [0, 0, 32], sizes = [4, 4, 8], strides = [1, 1, 1]} : vector<4x4x64xf32> to vector<4x4x8xf32>
    %154 = vector.extract_strided_slice %146 {offsets = [0, 0, 40], sizes = [4, 4, 8], strides = [1, 1, 1]} : vector<4x4x64xf32> to vector<4x4x8xf32>
    %155 = arith.maximumf %153, %154 : vector<4x4x8xf32>
    %156 = vector.extract_strided_slice %146 {offsets = [0, 0, 48], sizes = [4, 4, 8], strides = [1, 1, 1]} : vector<4x4x64xf32> to vector<4x4x8xf32>
    %157 = vector.extract_strided_slice %146 {offsets = [0, 0, 56], sizes = [4, 4, 8], strides = [1, 1, 1]} : vector<4x4x64xf32> to vector<4x4x8xf32>
    %158 = arith.maximumf %156, %157 : vector<4x4x8xf32>
    %159 = tpu.concatenate %149, %152, %155, %158 in 2 : vector<4x4x8xf32>, vector<4x4x8xf32>, vector<4x4x8xf32>, vector<4x4x8xf32> -> vector<4x4x32xf32>
    %160 = vector.extract_strided_slice %159 {offsets = [0, 0, 0], sizes = [4, 1, 32], strides = [1, 1, 1]} : vector<4x4x32xf32> to vector<4x1x32xf32>
    %161 = vector.shape_cast %160 : vector<4x1x32xf32> to vector<4x32xf32>
    %162 = vector.extract_strided_slice %159 {offsets = [0, 1, 0], sizes = [4, 1, 32], strides = [1, 1, 1]} : vector<4x4x32xf32> to vector<4x1x32xf32>
    %163 = vector.shape_cast %162 : vector<4x1x32xf32> to vector<4x32xf32>
    %164 = vector.extract_strided_slice %159 {offsets = [0, 2, 0], sizes = [4, 1, 32], strides = [1, 1, 1]} : vector<4x4x32xf32> to vector<4x1x32xf32>
    %165 = vector.shape_cast %164 : vector<4x1x32xf32> to vector<4x32xf32>
    %166 = vector.extract_strided_slice %159 {offsets = [0, 3, 0], sizes = [4, 1, 32], strides = [1, 1, 1]} : vector<4x4x32xf32> to vector<4x1x32xf32>
    %167 = vector.shape_cast %166 : vector<4x1x32xf32> to vector<4x32xf32>
    %168 = tpu.concatenate %161, %163, %165, %167 in 1 : vector<4x32xf32>, vector<4x32xf32>, vector<4x32xf32>, vector<4x32xf32> -> vector<4x128xf32>
    %c0_144 = arith.constant 0 : index
    %c0_145 = arith.constant 0 : index
    %c0_146 = arith.constant 0 : index
    %169 = vector.load %arg6[%c0_144, %c0_145, %c0_146] : memref<1x4x128xf32, #tpu.memory_space<vmem>>, vector<1x4x128xf32>
    %170 = vector.shape_cast %169 : vector<1x4x128xf32> to vector<4x128xf32>
    %171 = vector.shape_cast %168 : vector<4x128xf32> to vector<1x4x128xf32>
    tpu.vector_store %arg6[%c0_144, %c0_145, %c0_146], %171 {strides = array<i32>} : memref<1x4x128xf32, #tpu.memory_space<vmem>>, vector<1x4x128xf32>,
    return
  }
  func.func @transform_0(%arg0: i32) -> (i32, i32, i32, i32) {
    %c0_i32 = arith.constant 0 : i32
    %c0_i32_0 = arith.constant 0 : i32
    %c0_i32_1 = arith.constant 0 : i32
    %c0_i32_2 = arith.constant 0 : i32
    return %arg0, %c0_i32, %c0_i32_0, %c0_i32_1 : i32, i32, i32, i32
  }
  func.func @transform_1(%arg0: i32) -> (i32, i32) {
    %c0_i32 = arith.constant 0 : i32
    %c0_i32_0 = arith.constant 0 : i32
    %c0_i32_1 = arith.constant 0 : i32
    return %c0_i32, %c0_i32_0 : i32, i32
  }
  func.func @transform_2(%arg0: i32) -> (i32, i32) {
    %c0_i32 = arith.constant 0 : i32
    %c0_i32_0 = arith.constant 0 : i32
    %c0_i32_1 = arith.constant 0 : i32
    return %c0_i32, %c0_i32_0 : i32, i32
  }
  func.func @transform_3(%arg0: i32) -> (i32, i32) {
    %c0_i32 = arith.constant 0 : i32
    %c0_i32_0 = arith.constant 0 : i32
    %c0_i32_1 = arith.constant 0 : i32
    return %c0_i32, %c0_i32_0 : i32, i32
  }
  func.func @transform_4(%arg0: i32) -> (i32, i32) {
    %c0_i32 = arith.constant 0 : i32
    %c0_i32_0 = arith.constant 0 : i32
    %c0_i32_1 = arith.constant 0 : i32
    return %c0_i32, %c0_i32_0 : i32, i32
  }
  func.func @transform_5(%arg0: i32) -> (i32, i32, i32) {
    %c0_i32 = arith.constant 0 : i32
    %c0_i32_0 = arith.constant 0 : i32
    %c0_i32_1 = arith.constant 0 : i32
    return %arg0, %c0_i32, %c0_i32_0 : i32, i32, i32
  }
}

</mosaic_0001>

<bundles_post_ra>
// kernel: tile.13
= control target key start
LH: loop header
LB: loop body
LE: loop exit
PB: predicated region body
PF: predicated region fallthrough
CT: control target
= control target key end

     0   :  { %s22_s0 = inlined_call_operand.vmem [shape: f32[8], index: 0, kind: input, shape index: {}]   ;;  %s23_s1 = inlined_call_operand.vmem [shape: f32[8,8], index: 1, kind: output, shape index: {}]  }
   0x1   :  { %v4_v0 = vld [vmem:[%s22_s0] ss:$0 sm:$0xff] }
   0x2   :  { %5 = vst [vmem:[%s23_s1] sm:$0xff] %v4_v0 }

// kernel: tile.14
= control target key start
LH: loop header
LB: loop body
LE: loop exit
PB: predicated region body
PF: predicated region fallthrough
CT: control target
= control target key end

     0   :  { %s67_s10 = smov 56   ;;  %s68_s11 = smov 40   ;;  %vm3_vm0 = vcmask 64512   ;;  %vm9_vm1 = vcmask 523712   ;;  %vm15_vm2 = vcmask 458112   ;;  %vm21_vm3 = vcmask 392512   ;;  %s111_s0 = inlined_call_operand.vmem [shape: f32[8,8], index: 0, kind: input, shape index: {}]   ;;  %s112_s1 = inlined_call_operand.vmem [shape: f32[1,64], index: 1, kind: output, shape index: {}]  }
   0x1   :  { %v53_v0 = vld [vmem:[%s111_s0 + $0x7] sm:$0x1]   ;;  %v55_v1 = vld [vmem:[%s111_s0 + $0x5] sm:$0x1]   ;;  %v54_v2 = vld [vmem:[%s111_s0 + $0x6] sm:$0x1]  }
   0x2   :  { %7 = vrot.lane.b32.xlu0 %v53_v0, %s67_s10  ;;  %19 = vrot.lane.b32.xlu1 %v55_v1, %s68_s11  ;;  %v56_v3 = vld [vmem:[%s111_s0 + $0x4] sm:$0x1]   ;;  %v2_v4 = vld [vmem:[%s111_s0] sm:$0x1]   ;;  %s69_s18 = smov 48   ;;  %s70_s19 = smov 32  }
   0x3   :  { %4 = vst.msk [vmem:[#allocation0] sm:$0x1] %vm3_vm0, %v2_v4   ;;  %v57_v5 = vld [vmem:[%s111_s0 + $0x3] sm:$0x1]   ;;  %v58_v6 = vld [vmem:[%s111_s0 + $0x2] sm:$0x1]  }
   0x4   :  { %s71_s24 = smov 24   ;;  %s72_s25 = smov 16   ;;  %v59_v7 = vld [vmem:[%s111_s0 + $0x1] sm:$0x1]   ;;  %vm27_vm4 = vcmask 326912   ;;  %vm33_vm5 = vcmask 261312  }
   0x5   :  { %s73_s0 = smov 8   ;;  %vm39_vm6 = vcmask 195712   ;;  %vm45_vm7 = vcmask 130112  }
   0x6   :  { %13 = vrot.lane.b32.xlu0 %v54_v2, %s69_s18  ;;  %25 = vrot.lane.b32.xlu1 %v56_v3, %s70_s19 }
   0xa   :  { %31 = vrot.lane.b32.xlu0 %v57_v5, %s71_s24  ;;  %37 = vrot.lane.b32.xlu1 %v58_v6, %s72_s25 }
   0xe   :  { %43 = vrot.lane.b32.xlu0 %v59_v7, %s73_s0 }
  0x74   :  { %v8_v8 = vpop.permute.xlu0 %7   ;;  %v20_v9 = vpop.permute.xlu1 %19  }
  0x75   :  { %10 = vst.msk [vmem:[#allocation0] sm:$0x1] %vm9_vm1, %v8_v8  }
  0x78   :  { %v14_v10 = vpop.permute.xlu0 %13   ;;  %v26_v11 = vpop.permute.xlu1 %25  }
  0x79   :  { %16 = vst.msk [vmem:[#allocation0] sm:$0x1] %vm15_vm2, %v14_v10  }
  0x7a   :  { %22 = vst.msk [vmem:[#allocation0] sm:$0x1] %vm21_vm3, %v20_v9  }
  0x7b   :  { %28 = vst.msk [vmem:[#allocation0] sm:$0x1] %vm27_vm4, %v26_v11  }
  0x7c   :  { %v32_v12 = vpop.permute.xlu0 %31   ;;  %v38_v13 = vpop.permute.xlu1 %37  }
  0x7d   :  { %34 = vst.msk [vmem:[#allocation0] sm:$0x1] %vm33_vm5, %v32_v12  }
  0x7e   :  { %40 = vst.msk [vmem:[#allocation0] sm:$0x1] %vm39_vm6, %v38_v13  }
  0x80   :  { %v44_v14 = vpop.permute.xlu0 %43  }
  0x81   :  { %46 = vst.msk [vmem:[#allocation0] sm:$0x1] %vm45_vm7, %v44_v14  }
  0x88   :  { %v50_v15 = vld [vmem:[#allocation0] sm:$0x1] }
  0x89   :  { %52 = vst [vmem:[%s112_s1] sm:$0x1] %v50_v15 }

// kernel: res_conv_forward.1
= control target key start
LH: loop header
LB: loop body
LE: loop exit
PB: predicated region body
PF: predicated region fallthrough
CT: control target
= control target key end

     0   :  { %s2658_s18 = smov 0   ;;  %s3381_s0 = inlined_call_operand.vmem [shape: f32[2,8,8,32], index: 0, kind: input, shape index: {}]   ;;  %s3382_s1 = inlined_call_operand.vmem [shape: bf16[360,64], index: 1, kind: input, shape index: {}]   ;;  %s3383_s2 = inlined_call_operand.vmem [shape: f32[1,64], index: 2, kind: input, shape index: {}]   ;;  %s3384_s3 = inlined_call_operand.vmem [shape: bf16[752,64], index: 3, kind: input, shape index: {}]   ;;  %s3385_s4 = inlined_call_operand.vmem [shape: f32[1,64], index: 4, kind: input, shape index: {}]   ;;  %s3386_s5 = inlined_call_operand.vmem [shape: f32[2,4,128], index: 5, kind: output, shape index: {}]  }
   0x1 LB: > { %s2265_s19 = sadd.s32 4294967295, %s2610_s18   ;;  %p2269_p0 = scmp.ge.s32.totalorder %s2610_s18, 1  ;;  %s2610_s18 = sphi %s2658_s18, %s15_s18  }
   0x2   : > { %p187_p1 = scmp.lt.s32.totalorder %s2610_s18, 3 }
   0x4   : > { %p188_p2 = pnand %p2269_p0, %p187_p1 }
   0x5   : > { %p2666_p3 = scmp.lt.s32.totalorder (!%p188_p2), %s2265_s19, 1  ;;  %vm257_vm0 = vcmask (!%p188_p2), 31744   ;;  %vm266_vm1 = vcmask (!%p188_p2), 326944   ;;  %v2612_v0 = vmov (!%p188_p2), 0.0   ;;  %vm240_vm2 = vcmask (!%p188_p2), 319488   ;;  %s2613_s25 = smov (!%p188_p2), 4  }
   0x6   : > { %191 = sbr.rel (%p188_p2) target bundleno = 1474 (0x5c2), region = 40  ;;  %258 = vst.msk [vmem:[#allocation2 + $0x11] sm:$0xff] (!%p188_p2), %vm257_vm0, %v2612_v0  ;;  %259 = vst.msk [vmem:[#allocation2 + $0x21] sm:$0xff] (!%p188_p2), %vm257_vm0, %v2612_v0  ;;  %vm232_vm3 = vcmask (!%p188_p2), 326656   ;;  %vm234_vm4 = vcmask (!%p188_p2), 320512   ;;  %v2534_v13 = vld [vmem:[%s3382_s1 + $0x40] sm:$0xff] (!%p188_p2)  }
   0x7   : > { %260 = vst.msk [vmem:[#allocation2 + $0x31] sm:$0xff] (!%p188_p2), %vm257_vm0, %v2612_v0  ;;  %261 = vst.msk [vmem:[#allocation2 + $0x41] sm:$0xff] (!%p188_p2), %vm257_vm0, %v2612_v0  ;;  %v2535_v14 = vld [vmem:[%s3382_s1] sm:$0xff] (!%p188_p2)   ;;  %v2536_v15 = vld [vmem:[%s3382_s1 + $0x48] sm:$0xff] (!%p188_p2)   ;;  %2356 = vmatprep.subr.bf16.mxu0 (!%p188_p2), %v2534_v13  ;;  %vm307_vm5 = vcmask (!%p188_p2), 293920   ;;  %s2614_s6 = smov (!%p188_p2), 32  }
   0x8   : > { %262 = vst.msk [vmem:[#allocation2 + $0x51] sm:$0xff] (!%p188_p2), %vm257_vm0, %v2612_v0  ;;  %263 = vst.msk [vmem:[#allocation2 + $0x61] sm:$0xff] (!%p188_p2), %vm257_vm0, %v2612_v0  ;;  %2357 = vmatpush3.bf16.msra.mxu0 (!%p188_p2), %v2535_v14  ;;  %v2537_v16 = vld [vmem:[%s3382_s1 + $0x8] sm:$0xff] (!%p188_p2)   ;;  %v2538_v17 = vld [vmem:[%s3382_s1 + $0x50] sm:$0xff] (!%p188_p2)   ;;  %s2615_s7 = smov (!%p188_p2), 120   ;;  %s2616_s12 = smov (!%p188_p2), 72  }
   0x9   : > { %264 = vst.msk [vmem:[#allocation2 + $0x71] sm:$0xff] (!%p188_p2), %vm257_vm0, %v2612_v0  ;;  %265 = vst.msk [vmem:[#allocation2 + $0x81] sm:$0xff] (!%p188_p2), %vm257_vm0, %v2612_v0  ;;  %2358 = vmatprep.subr.bf16.mxu0 (!%p188_p2), %v2536_v15  ;;  %v2539_v18 = vld [vmem:[%s3382_s1 + $0x10] sm:$0xff] (!%p188_p2)   ;;  %v2540_v19 = vld [vmem:[%s3382_s1 + $0x58] sm:$0xff] (!%p188_p2)   ;;  %s2617_s13 = smov (!%p188_p2), 40   ;;  %s2618_s14 = smov (!%p188_p2), 112  }
   0xa   : > { %267 = vst.msk [vmem:[#allocation2 + $0x11] sm:$0xff] (!%p188_p2), %vm266_vm1, %v2612_v0  ;;  %269 = vst.msk [vmem:[#allocation2 + $0x31] sm:$0xff] (!%p188_p2), %vm266_vm1, %v2612_v0  ;;  %v2541_v20 = vld [vmem:[%s3382_s1 + $0x18] sm:$0xff] (!%p188_p2)   ;;  %v2542_v23 = vld [vmem:[%s3382_s1 + $0x60] sm:$0xff] (!%p188_p2)   ;;  %s2619_s15 = smov (!%p188_p2), 80   ;;  %s2620_s20 = smov (!%p188_p2), 24  }
   0xb   : > { %268 = vst.msk [vmem:[#allocation2 + $0x21] sm:$0xff] (!%p188_p2), %vm266_vm1, %v2612_v0  ;;  %270 = vst.msk [vmem:[#allocation2 + $0x41] sm:$0xff] (!%p188_p2), %vm266_vm1, %v2612_v0  ;;  %v2543_v24 = vld [vmem:[%s3382_s1 + $0x20] sm:$0xff] (!%p188_p2)   ;;  %v2544_v28 = vld [vmem:[%s3382_s1 + $0x68] sm:$0xff] (!%p188_p2)   ;;  %vm428_vm6 = vcmask (!%p188_p2), 261120   ;;  %vm464_vm7 = vcmask (!%p188_p2), 589056  }
   0xc   : > { %271 = vst.msk [vmem:[#allocation2 + $0x51] sm:$0xff] (!%p188_p2), %vm266_vm1, %v2612_v0  ;;  %272 = vst.msk [vmem:[#allocation2 + $0x61] sm:$0xff] (!%p188_p2), %vm266_vm1, %v2612_v0  ;;  %2359 = vmatpush3.bf16.msra.mxu0 (!%p188_p2), %v2537_v16  ;;  %v2545_v29 = vld [vmem:[%s3382_s1 + $0x28] sm:$0xff] (!%p188_p2)   ;;  %v2546_v35 = vld [vmem:[%s3382_s1 + $0x70] sm:$0xff] (!%p188_p2)   ;;  %vm497_vm8 = vcmask (!%p188_p2), 917056   ;;  %vm360_vm9 = vcmask (!%p188_p2), 654656  }
   0xd   : > { %s3389_s19 = smov (!%p2666_p3, %s2265_s19), 1  ;;  %273 = vst.msk [vmem:[#allocation2 + $0x71] sm:$0xff] %vm266_vm1, %v2612_v0  ;;  %274 = vst.msk [vmem:[#allocation2 + $0x81] sm:$0xff] %vm266_vm1, %v2612_v0  ;;  %2360 = vmatprep.subr.bf16.mxu0 %v2538_v17  ;;  %v2547_v36 = vld [vmem:[%s3382_s1 + $0x30] sm:$0xff]   ;;  %v2548_v47 = vld [vmem:[%s3382_s1 + $0x78] sm:$0xff]   ;;  %vm531_vm10 = vcmask 1048448  }
   0xe   : > { %241 = vst.msk [vmem:[#allocation2 + $0x10] sm:$0x1] %vm240_vm2, %v2612_v0  ;;  %242 = vst.msk [vmem:[#allocation2 + $0x20] sm:$0x1] %vm240_vm2, %v2612_v0  ;;  %s2355_s21 = sshll.u32 %s3389_s19, 6  ;;  %v2549_v48 = vld [vmem:[%s3382_s1 + $0x38] sm:$0xff]  }
   0xf   : > { %243 = vst.msk [vmem:[#allocation2 + $0x30] sm:$0x1] %vm240_vm2, %v2612_v0  ;;  %244 = vst.msk [vmem:[#allocation2 + $0x40] sm:$0x1] %vm240_vm2, %v2612_v0  ;;  %s218_s24 = scalar_lea.vmem %s3381_s0, %s2355_s21  ;;  %v2845_v17 = vld [vmem:[%s3382_s1 + $0x80] sm:$0xff]   ;;  %s2621_s21 = smov 64  }
  0x10   : > { %245 = vst.msk [vmem:[#allocation2 + $0x50] sm:$0x1] %vm240_vm2, %v2612_v0  ;;  %246 = vst.msk [vmem:[#allocation2 + $0x60] sm:$0x1] %vm240_vm2, %v2612_v0  ;;  %v2742_v1 = vld [vmem:[%s218_s24] sm:$0xff]  ;;  %v2744_v2 = vld [vmem:[%s218_s24 + $0x8] sm:$0xff]  ;;  %2361 = vmatpush3.bf16.msra.mxu0 %v2539_v18 }
  0x11   : > { %247 = vst.msk [vmem:[#allocation2 + $0x70] sm:$0x1] %vm240_vm2, %v2612_v0  ;;  %248 = vst.msk [vmem:[#allocation2 + $0x80] sm:$0x1] %vm240_vm2, %v2612_v0  ;;  %v2746_v3 = vld [vmem:[%s218_s24 + $0x10] sm:$0xff]  ;;  %283 = vrot.lane.b32.xlu0 %v2742_v1, %s2613_s25  ;;  %v1327_v4 = vpack.c.bf16 %v2744_v2, %v2742_v1  ;;  %v2751_v5 = vld [vmem:[%s218_s24 + $0x18] sm:$0xff]  ;;  %2362 = vmatprep.subr.bf16.mxu0 %v2540_v19 }
  0x12   : > { %249 = vst.msk [vmem:[#allocation2 + $0x19] sm:$0x1] %vm240_vm2, %v2612_v0  ;;  %250 = vst.msk [vmem:[#allocation2 + $0x29] sm:$0x1] %vm240_vm2, %v2612_v0  ;;  %287 = vrot.lane.b32.xlu1 %v2746_v3, %s2613_s25  ;;  %v2754_v6 = vld [vmem:[%s218_s24 + $0x20] sm:$0xff]  ;;  %v1328_v7 = vpack.c.bf16 %v2751_v5, %v2746_v3  ;;  %v2758_v8 = vld [vmem:[%s218_s24 + $0x28] sm:$0xff] }
  0x13   : > { %251 = vst.msk [vmem:[#allocation2 + $0x39] sm:$0x1] %vm240_vm2, %v2612_v0  ;;  %252 = vst.msk [vmem:[#allocation2 + $0x49] sm:$0x1] %vm240_vm2, %v2612_v0  ;;  %v2760_v9 = vld [vmem:[%s218_s24 + $0x30] sm:$0xff]  ;;  %v2762_v10 = vld [vmem:[%s218_s24 + $0x38] sm:$0xff]  ;;  %v1329_v11 = vpack.c.bf16 %v2758_v8, %v2754_v6 }
  0x14   : > { %253 = vst.msk [vmem:[#allocation2 + $0x59] sm:$0x1] %vm240_vm2, %v2612_v0  ;;  %254 = vst.msk [vmem:[#allocation2 + $0x69] sm:$0x1] %vm240_vm2, %v2612_v0  ;;  %v1330_v12 = vpack.c.bf16 %v2762_v10, %v2760_v9  ;;  %2363 = vmatpush3.bf16.msra.mxu0 %v2541_v20  ;;  %vm533_vm11 = vcmask 195584   ;;  %vm393_vm12 = vcmask 982656  }
  0x15   : > { %255 = vst.msk [vmem:[#allocation2 + $0x79] sm:$0x1] %vm240_vm2, %v2612_v0  ;;  %256 = vst.msk [vmem:[#allocation2 + $0x89] sm:$0x1] %vm240_vm2, %v2612_v0  ;;  %285 = vrot.lane.b32.xlu0 %v2744_v2, %s2613_s25  ;;  %2364 = vmatprep.subr.bf16.mxu0 %v2542_v23  ;;  %vm426_vm13 = vcmask 1048512   ;;  %vm819_vm14 = vcmask 1043456  }
  0x16   : > { %233 = vst.msk [vmem:[#allocation2] sm:$0xff] %vm232_vm3, %v2612_v0  ;;  %237 = vst.msk [vmem:[#allocation2 + $0x90] sm:$0xff] %vm232_vm3, %v2612_v0  ;;  %289 = vrot.lane.b32.xlu1 %v2751_v5, %s2613_s25  ;;  %vm569_vm15 = vcmask 523456   ;;  %vm602_vm0 = vcmask 851456   ;;  %vm806_vm1 = vcmask 850944   ;;  %vm986_vm2 = vcmask 64512  }
  0x17   : > { %235 = vst.msk [vmem:[#allocation2 + $0x8] sm:$0x3] %vm234_vm4, %v2612_v0  ;;  %238 = vst.msk [vmem:[#allocation2 + $0x98] sm:$0x3] %vm234_vm4, %v2612_v0  ;;  %vm961_vm4 = vcmask 654336   ;;  %s2625_s30 = smov 96  }
  0x18   : > { %2365 = vmatpush3.bf16.msra.mxu0 %v2543_v24  ;;  %987 = vst.msk [vmem:[#allocation3 + $0x11] sm:$0xff] %vm986_vm2, %v2612_v0  ;;  %988 = vst.msk [vmem:[#allocation3 + $0x21] sm:$0xff] %vm986_vm2, %v2612_v0  ;;  %s2626_s8 = smov 48   ;;  %s2627_s27 = smov 104  }
  0x19   : > { %291 = vrot.lane.b32.xlu0 %v2754_v6, %s2613_s25  ;;  %2366 = vmatprep.subr.bf16.mxu0 %v2544_v28  ;;  %989 = vst.msk [vmem:[#allocation3 + $0x31] sm:$0xff] %vm986_vm2, %v2612_v0  ;;  %990 = vst.msk [vmem:[#allocation3 + $0x41] sm:$0xff] %vm986_vm2, %v2612_v0 }
  0x1a   : > { %293 = vrot.lane.b32.xlu1 %v2758_v8, %s2613_s25  ;;  %991 = vst.msk [vmem:[#allocation3 + $0x51] sm:$0xff] %vm986_vm2, %v2612_v0  ;;  %992 = vst.msk [vmem:[#allocation3 + $0x61] sm:$0xff] %vm986_vm2, %v2612_v0 }
  0x1b   : > { %993 = vst.msk [vmem:[#allocation3 + $0x71] sm:$0xff] %vm986_vm2, %v2612_v0  ;;  %994 = vst.msk [vmem:[#allocation3 + $0x81] sm:$0xff] %vm986_vm2, %v2612_v0 }
  0x1c   : > { %2367 = vmatpush3.bf16.msra.mxu0 %v2545_v29  ;;  %962 = vst.msk [vmem:[#allocation3] sm:$0xff] %vm961_vm4, %v2612_v0  ;;  %966 = vst.msk [vmem:[#allocation3 + $0x90] sm:$0xff] %vm961_vm4, %v2612_v0 }
  0x1d   : > { %295 = vrot.lane.b32.xlu0 %v2760_v9, %s2613_s25  ;;  %v316_v27 = vld [vmem:[#allocation2] sm:$0xff]  ;;  %2368 = vmatprep.subr.bf16.mxu0 %v2546_v35 }
  0x1e   : > { %297 = vrot.lane.b32.xlu1 %v2762_v10, %s2613_s25  ;;  %v332_v46 = vld [vmem:[#allocation2 + $0x1] sm:$0xff]  ;;  %s2624_s25 = smov 16  }
  0x1f   : > { %v365_v55 = vld [vmem:[#allocation2 + $0x2] sm:$0xff] }
  0x20   : > { %2369 = vmatpush3.bf16.msra.mxu0 %v2547_v36 }
  0x21   : > { %2370 = vmatprep.subr.bf16.mxu0 %v2548_v47 }
  0x23   : > { %v1247_v3 = vld [vmem:[#allocation3 + $0x90] sm:$0xff] }
  0x24   : > { %2371 = vmatpush3.bf16.msra.mxu0 %v2549_v48 }
  0x25   : > { %2487 = vmatprep.subr.bf16.mxu0 %v2845_v17 }
  0x83   : > { %v284_v21 = vpop.permute.xlu0 %283 }
  0x84   : > { %v288_v22 = vpop.permute.xlu1 %287  ;;  %308 = vst.msk [vmem:[#allocation2 + $0x11] sm:$0xff] %vm307_vm5, %v284_v21 }
  0x85   : > { %310 = vst.msk [vmem:[#allocation2 + $0x31] sm:$0xff] %vm307_vm5, %v288_v22 }
  0x87   : > { %v286_v25 = vpop.permute.xlu0 %285 }
  0x88   : > { %v290_v26 = vpop.permute.xlu1 %289  ;;  %309 = vst.msk [vmem:[#allocation2 + $0x21] sm:$0xff] %vm307_vm5, %v286_v25 }
  0x89   : > { %311 = vst.msk [vmem:[#allocation2 + $0x41] sm:$0xff] %vm307_vm5, %v290_v26 }
  0x8b   : > { %v398_v30 = vld [vmem:[#allocation2 + $0x10] sm:$0xff]  ;;  %v292_v31 = vpop.permute.xlu0 %291 }
  0x8c   : > { %v294_v32 = vpop.permute.xlu1 %293  ;;  %312 = vst.msk [vmem:[#allocation2 + $0x51] sm:$0xff] %vm307_vm5, %v292_v31  ;;  %v324_v33 = vpack.c.bf16 %v398_v30, %v316_v27  ;;  %v504_v34 = vld [vmem:[#allocation2 + $0x30] sm:$0xff] }
  0x8d   : > { %313 = vst.msk [vmem:[#allocation2 + $0x61] sm:$0xff] %vm307_vm5, %v294_v32  ;;  %v436_v37 = vld [vmem:[#allocation2 + $0x11] sm:$0xff] }
  0x8e   : > { %328 = vst.msk [vmem:[#allocation4] sm:$0xff] %vm232_vm3, %v324_v33  ;;  %v469_v49 = vld [vmem:[#allocation2 + $0x12] sm:$0xff]  ;;  %v340_v53 = vpack.c.bf16 %v436_v37, %v332_v46 }
  0x8f   : > { %v437_v38 = vld [vmem:[#allocation2 + $0x21] sm:$0xff]  ;;  %v296_v40 = vpop.permute.xlu0 %295  ;;  %v373_v58 = vpack.c.bf16 %v469_v49, %v365_v55  ;;  %v438_v61 = vld [vmem:[#allocation2 + $0x31] sm:$0xff] }
  0x90   : > { %v399_v39 = vld [vmem:[#allocation2 + $0x20] sm:$0xff]  ;;  %v298_v41 = vpop.permute.xlu1 %297  ;;  %v444_v42 = vpack.c.bf16 %v437_v38, %v436_v37  ;;  %314 = vst.msk [vmem:[#allocation2 + $0x71] sm:$0xff] %vm307_vm5, %v296_v40  ;;  %v471_v14 = vld [vmem:[#allocation2 + $0x32] sm:$0xff]  ;;  %v341_v16 = vpack.c.bf16 %v438_v61, %v437_v38  ;;  %v2551_v55 = vld [vmem:[%s3382_s1 + $0x88] sm:$0xff]  }
  0x91   : > { %v406_v43 = vpack.c.bf16 %v399_v39, %v398_v30  ;;  %v511_v44 = vpack.c.bf16 %v504_v34, %v399_v39  ;;  %315 = vst.msk [vmem:[#allocation2 + $0x81] sm:$0xff] %vm307_vm5, %v298_v41  ;;  %v470_v45 = vld [vmem:[#allocation2 + $0x22] sm:$0xff]  ;;  %v510_v37 = vld [vmem:[#allocation2 + $0x90] sm:$0xff]  ;;  %vm963_vm5 = vcmask 648192  }
  0x92   : > { %452 = vrot.lane.b32.xlu1 %v444_v42, %s2614_s6  ;;  %v401_v50 = vld [vmem:[#allocation2 + $0x40] sm:$0xff]  ;;  %v477_v52 = vpack.c.bf16 %v470_v45, %v469_v49  ;;  %v374_v18 = vpack.c.bf16 %v471_v14, %v470_v45  ;;  %v548_v40 = vld [vmem:[#allocation2 + $0x91] sm:$0xff]  ;;  %964 = vst.msk [vmem:[#allocation3 + $0x8] sm:$0x3] %vm963_vm5, %v2612_v0  ;;  %967 = vst.msk [vmem:[#allocation3 + $0x98] sm:$0x3] %vm963_vm5, %v2612_v0 }
  0x93   : > { %414 = vrot.lane.b32.xlu0 %v406_v43, %s2615_s7  ;;  %329 = vst.msk [vmem:[#allocation4 + $0x18] sm:$0xff] %vm232_vm3, %v511_v44  ;;  %v506_v51 = vld [vmem:[#allocation2 + $0x50] sm:$0xff]  ;;  %v439_v60 = vld [vmem:[#allocation2 + $0x41] sm:$0xff]  ;;  %v407_v63 = vpack.c.bf16 %v401_v50, %v504_v34  ;;  %vm1306_vm5 = vcmask 1047936  }
  0x94   : > { %v512_v54 = vpack.c.bf16 %v506_v51, %v401_v50  ;;  %v403_v56 = vld [vmem:[#allocation2 + $0x60] sm:$0xff]  ;;  %v445_v62 = vpack.c.bf16 %v439_v60, %v438_v61  ;;  %v440_v20 = vld [vmem:[#allocation2 + $0x51] sm:$0xff] }
  0x95   : > { %v472_v13 = vld [vmem:[#allocation2 + $0x42] sm:$0xff]  ;;  %v408_v22 = vpack.c.bf16 %v403_v56, %v506_v51  ;;  %v473_v24 = vld [vmem:[#allocation2 + $0x52] sm:$0xff]  ;;  %v342_v26 = vpack.c.bf16 %v440_v20, %v439_v60 }
  0x96   : > { %485 = vrot.lane.b32.xlu1 %v477_v52, %s2616_s12  ;;  %330 = vst.msk [vmem:[#allocation4 + $0x30] sm:$0xff] %vm232_vm3, %v512_v54  ;;  %v478_v15 = vpack.c.bf16 %v472_v13, %v471_v14  ;;  %v441_v19 = vld [vmem:[#allocation2 + $0x61] sm:$0xff]  ;;  %v375_v27 = vpack.c.bf16 %v473_v24, %v472_v13  ;;  %v581_v42 = vld [vmem:[#allocation2 + $0x92] sm:$0xff] }
  0x97   : > { %348 = vrot.lane.b32.xlu0 %v340_v53, %s2617_s13  ;;  %v508_v57 = vld [vmem:[#allocation2 + $0x70] sm:$0xff]  ;;  %v446_v21 = vpack.c.bf16 %v441_v19, %v440_v20  ;;  %v474_v23 = vld [vmem:[#allocation2 + $0x62] sm:$0xff] }
  0x98   : > { %v513_v59 = vpack.c.bf16 %v508_v57, %v403_v56  ;;  %v479_v25 = vpack.c.bf16 %v474_v23, %v473_v24  ;;  %v443_v28 = vld [vmem:[#allocation2 + $0x81] sm:$0xff]  ;;  %v442_v30 = vld [vmem:[#allocation2 + $0x71] sm:$0xff] }
  0x99   : > { %v405_v29 = vld [vmem:[#allocation2 + $0x80] sm:$0xff]  ;;  %v447_v31 = vpack.c.bf16 %v443_v28, %v442_v30  ;;  %v475_v34 = vld [vmem:[#allocation2 + $0x72] sm:$0xff]  ;;  %v343_v36 = vpack.c.bf16 %v442_v30, %v441_v19  ;;  %v552_v41 = vpack.c.bf16 %v548_v40, %v443_v28  ;;  %v2555_v19 = vld [vmem:[%s3382_s1 + $0xa8] sm:$0xff]  }
  0x9a   : > { %519 = vrot.lane.b32.xlu1 %v511_v44, %s2618_s14  ;;  %331 = vst.msk [vmem:[#allocation4 + $0x48] sm:$0xff] %vm232_vm3, %v513_v59  ;;  %v409_v32 = vpack.c.bf16 %v405_v29, %v508_v57  ;;  %v476_v33 = vld [vmem:[#allocation2 + $0x82] sm:$0xff]  ;;  %v514_v38 = vpack.c.bf16 %v510_v37, %v405_v29  ;;  %v376_v39 = vpack.c.bf16 %v475_v34, %v474_v23  ;;  %vm995_vm3 = vcmask 654912  }
  0x9b   : > { %381 = vrot.lane.b32.xlu0 %v373_v58, %s2619_s15  ;;  %v480_v35 = vpack.c.bf16 %v476_v33, %v475_v34  ;;  %v585_v43 = vpack.c.bf16 %v581_v42, %v476_v33  ;;  %996 = vst.msk [vmem:[#allocation3 + $0x11] sm:$0xff] %vm995_vm3, %v2612_v0  ;;  %997 = vst.msk [vmem:[#allocation3 + $0x21] sm:$0xff] %vm995_vm3, %v2612_v0 }
  0x9c   : > { %998 = vst.msk [vmem:[#allocation3 + $0x31] sm:$0xff] %vm995_vm3, %v2612_v0  ;;  %999 = vst.msk [vmem:[#allocation3 + $0x41] sm:$0xff] %vm995_vm3, %v2612_v0 }
  0x9d   : > { %1000 = vst.msk [vmem:[#allocation3 + $0x51] sm:$0xff] %vm995_vm3, %v2612_v0  ;;  %1001 = vst.msk [vmem:[#allocation3 + $0x61] sm:$0xff] %vm995_vm3, %v2612_v0 }
  0x9e   : > { %454 = vrot.lane.b32.xlu1 %v445_v62, %s2614_s6  ;;  %v2553_v62 = vld [vmem:[%s3382_s1 + $0x98] sm:$0xff]   ;;  %1002 = vst.msk [vmem:[#allocation3 + $0x71] sm:$0xff] %vm995_vm3, %v2612_v0  ;;  %1003 = vst.msk [vmem:[#allocation3 + $0x81] sm:$0xff] %vm995_vm3, %v2612_v0  ;;  %vm1270_vm3 = vcmask 392192  }
  0x9f   : > { %416 = vrot.lane.b32.xlu0 %v407_v63, %s2615_s7 }
  0xa2   : > { %487 = vrot.lane.b32.xlu1 %v478_v15, %s2616_s12  ;;  %v2554_v15 = vld [vmem:[%s3382_s1 + $0xa0] sm:$0xff]  }
  0xa3   : > { %350 = vrot.lane.b32.xlu0 %v341_v16, %s2617_s13 }
  0xa6   : > { %521 = vrot.lane.b32.xlu1 %v512_v54, %s2618_s14 }
  0xa7   : > { %383 = vrot.lane.b32.xlu0 %v374_v18, %s2619_s15 }
  0xaa   : > { %456 = vrot.lane.b32.xlu1 %v446_v21, %s2614_s6 }
  0xab   : > { %418 = vrot.lane.b32.xlu0 %v408_v22, %s2615_s7  ;;  %v2556_v22 = vld [vmem:[%s3382_s1 + $0xb0] ss:$0 sps:$4 sm:$0xff]  }
  0xae   : > { %489 = vrot.lane.b32.xlu1 %v479_v25, %s2616_s12 }
  0xaf   : > { %352 = vrot.lane.b32.xlu0 %v342_v26, %s2617_s13 }
  0xb2   : > { %523 = vrot.lane.b32.xlu1 %v513_v59, %s2618_s14  ;;  %v2552_v59 = vld [vmem:[%s3382_s1 + $0x90] sm:$0xff]  }
  0xb3   : > { %385 = vrot.lane.b32.xlu0 %v375_v27, %s2619_s15 }
  0xb6   : > { %458 = vrot.lane.b32.xlu1 %v447_v31, %s2614_s6 }
  0xb7   : > { %420 = vrot.lane.b32.xlu0 %v409_v32, %s2615_s7 }
  0xba   : > { %491 = vrot.lane.b32.xlu1 %v480_v35, %s2616_s12 }
  0xbb   : > { %354 = vrot.lane.b32.xlu0 %v343_v36, %s2617_s13  ;;  %s2622_s13 = smov 8  }
  0xbe   : > { %525 = vrot.lane.b32.xlu1 %v514_v38, %s2618_s14 }
  0xbf   : > { %387 = vrot.lane.b32.xlu0 %v376_v39, %s2619_s15 }
  0xc2   : > { %559 = vrot.lane.b32.xlu1 %v342_v26, %s2620_s20  ;;  %v821_v26 = vsel %vm819_vm14, %v2556_v22, 0 }
  0xc3   : > { %557 = vrot.lane.b32.xlu0 %v341_v16, %s2620_s20 }
  0xc6   : > { %592 = vrot.lane.b32.xlu1 %v375_v27, %s2621_s21 }
  0xc7   : > { %590 = vrot.lane.b32.xlu0 %v374_v18, %s2621_s21 }
  0xca   : > { %563 = vrot.lane.b32.xlu1 %v552_v41, %s2620_s20 }
  0xcb   : > { %561 = vrot.lane.b32.xlu0 %v343_v36, %s2620_s20 }
  0xce   : > { %596 = vrot.lane.b32.xlu1 %v585_v43, %s2621_s21 }
  0xcf   : > { %594 = vrot.lane.b32.xlu0 %v376_v39, %s2621_s21 }
 0x104   : > { %v453_v44 = vpop.permute.xlu1 %452 }
 0x105   : > { %v415_v45 = vpop.permute.xlu0 %414 }
 0x106   : > { %429 = vst.msk [vmem:[#allocation4 + $0x8] sm:$0xff] %vm428_vm6, %v415_v45 }
 0x107   : > { %465 = vst.msk [vmem:[#allocation4 + $0x8] sm:$0xff] %vm464_vm7, %v453_v44 }
 0x108   : > { %v486_v46 = vpop.permute.xlu1 %485 }
 0x109   : > { %v349_v47 = vpop.permute.xlu0 %348  ;;  %498 = vst.msk [vmem:[#allocation4 + $0x8] sm:$0xff] %vm497_vm8, %v486_v46 }
 0x10a   : > { %361 = vst.msk [vmem:[#allocation4] sm:$0xff] %vm360_vm9, %v349_v47 }
 0x10c   : > { %v520_v48 = vpop.permute.xlu1 %519 }
 0x10d   : > { %v382_v49 = vpop.permute.xlu0 %381  ;;  %532 = vst.msk [vmem:[#allocation4 + $0x8] sm:$0xff] %vm531_vm10, %v520_v48 }
 0x10e   : > { %534 = vst.msk [vmem:[#allocation4 + $0x10] sm:$0xff] %vm533_vm11, %v520_v48 }
 0x10f   : > { %394 = vst.msk [vmem:[#allocation4] sm:$0xff] %vm393_vm12, %v382_v49 }
 0x110   : > { %427 = vst.msk [vmem:[#allocation4] sm:$0xff] %vm426_vm13, %v415_v45  ;;  %v455_v50 = vpop.permute.xlu1 %454 }
 0x111   : > { %v417_v51 = vpop.permute.xlu0 %416 }
 0x112   : > { %431 = vst.msk [vmem:[#allocation4 + $0x20] sm:$0xff] %vm428_vm6, %v417_v51 }
 0x113   : > { %466 = vst.msk [vmem:[#allocation4 + $0x20] sm:$0xff] %vm464_vm7, %v455_v50 }
 0x114   : > { %v488_v52 = vpop.permute.xlu1 %487  ;;  %v608_v54 = vld [vmem:[#allocation4 + $0x8] sm:$0xff] }
 0x115   : > { %v351_v53 = vpop.permute.xlu0 %350  ;;  %499 = vst.msk [vmem:[#allocation4 + $0x20] sm:$0xff] %vm497_vm8, %v488_v52  ;;  %855 = vmatprep.mubr.bf16.mxu0 %v608_v54 }
 0x116   : > { %362 = vst.msk [vmem:[#allocation4 + $0x18] sm:$0xff] %vm360_vm9, %v351_v53 }
 0x117   : > { %v607_v56 = vld [vmem:[#allocation4] sm:$0xff] }
 0x118   : > { %856 = vmatmul.mubr.bf16.vlgmr.msra.gmra.mrb[0].mxu0 %v607_v56  ;;  %v522_v57 = vpop.permute.xlu1 %521 }
 0x119   : > { %2488 = vmatpush3.bf16.msra.mxu0 %v2845_v17  ;;  %v384_v58 = vpop.permute.xlu0 %383  ;;  %535 = vst.msk [vmem:[#allocation4 + $0x20] sm:$0xff] %vm531_vm10, %v522_v57 }
 0x11a   : > { %2489 = vmatprep.subr.bf16.mxu0 %v2551_v55  ;;  %536 = vst.msk [vmem:[#allocation4 + $0x28] sm:$0xff] %vm533_vm11, %v522_v57 }
 0x11b   : > { %395 = vst.msk [vmem:[#allocation4 + $0x18] sm:$0xff] %vm393_vm12, %v384_v58 }
 0x11c   : > { %430 = vst.msk [vmem:[#allocation4 + $0x18] sm:$0xff] %vm426_vm13, %v417_v51  ;;  %v457_v60 = vpop.permute.xlu1 %456 }
 0x11d   : > { %2490 = vmatpush3.bf16.msra.mxu0 %v2551_v55  ;;  %v419_v61 = vpop.permute.xlu0 %418 }
 0x11e   : > { %2491 = vmatprep.subr.bf16.mxu0 %v2552_v59  ;;  %433 = vst.msk [vmem:[#allocation4 + $0x38] sm:$0xff] %vm428_vm6, %v419_v61 }
 0x11f   : > { %467 = vst.msk [vmem:[#allocation4 + $0x38] sm:$0xff] %vm464_vm7, %v457_v60 }
 0x120   : > { %v490_v63 = vpop.permute.xlu1 %489  ;;  %v611_v14 = vld [vmem:[#allocation4 + $0x20] sm:$0xff] }
 0x121   : > { %2492 = vmatpush3.bf16.msra.mxu0 %v2552_v59  ;;  %v353_v13 = vpop.permute.xlu0 %352  ;;  %500 = vst.msk [vmem:[#allocation4 + $0x38] sm:$0xff] %vm497_vm8, %v490_v63  ;;  %863 = vmatprep.mubr.bf16.mxu0 %v611_v14 }
 0x122   : > { %2493 = vmatprep.subr.bf16.mxu0 %v2553_v62  ;;  %363 = vst.msk [vmem:[#allocation4 + $0x30] sm:$0xff] %vm360_vm9, %v353_v13 }
 0x123   : > { %v610_v16 = vld [vmem:[#allocation4 + $0x18] sm:$0xff] }
 0x124   : > { %864 = vmatmul.mubr.bf16.gmra.mrb[4].mxu0 %v610_v16  ;;  %v524_v17 = vpop.permute.xlu1 %523 }
 0x125   : > { %2494 = vmatpush3.bf16.msra.mxu0 %v2553_v62  ;;  %v386_v18 = vpop.permute.xlu0 %385  ;;  %537 = vst.msk [vmem:[#allocation4 + $0x38] sm:$0xff] %vm531_vm10, %v524_v17 }
 0x126   : > { %2495 = vmatprep.subr.bf16.mxu0 %v2554_v15  ;;  %538 = vst.msk [vmem:[#allocation4 + $0x40] sm:$0xff] %vm533_vm11, %v524_v17  ;;  %v2273_v17 = vld [vmem:[%s3383_s2] ss:$0 sm:$0xff] }
 0x127   : > { %396 = vst.msk [vmem:[#allocation4 + $0x30] sm:$0xff] %vm393_vm12, %v386_v18 }
 0x128   : > { %432 = vst.msk [vmem:[#allocation4 + $0x30] sm:$0xff] %vm426_vm13, %v419_v61  ;;  %v459_v20 = vpop.permute.xlu1 %458 }
 0x129   : > { %2496 = vmatpush3.bf16.msra.mxu0 %v2554_v15  ;;  %v421_v21 = vpop.permute.xlu0 %420 }
 0x12a   : > { %2497 = vmatprep.subr.bf16.mxu0 %v2555_v19  ;;  %435 = vst.msk [vmem:[#allocation4 + $0x50] sm:$0xff] %vm428_vm6, %v421_v21 }
 0x12b   : > { %468 = vst.msk [vmem:[#allocation4 + $0x50] sm:$0xff] %vm464_vm7, %v459_v20  ;;  %vm969_vm7 = vcmask 647168  }
 0x12c   : > { %v492_v23 = vpop.permute.xlu1 %491  ;;  %v614_v25 = vld [vmem:[#allocation4 + $0x38] sm:$0xff]  ;;  %978 = vst.msk [vmem:[#allocation3 + $0x19] sm:$0x1] %vm969_vm7, %v2612_v0  ;;  %970 = vst.msk [vmem:[#allocation3 + $0x10] sm:$0x1] %vm969_vm7, %v2612_v0 }
 0x12d   : > { %2498 = vmatpush3.bf16.msra.mxu0 %v2555_v19  ;;  %v355_v24 = vpop.permute.xlu0 %354  ;;  %501 = vst.msk [vmem:[#allocation4 + $0x50] sm:$0xff] %vm497_vm8, %v492_v23  ;;  %871 = vmatprep.mubr.bf16.mxu0 %v614_v25  ;;  %vm1036_vm8 = vcmask 588864  }
 0x12e   : > { %2509 = vmatprep.subr.msk.bf16.mxu0 %vm819_vm14, %v2556_v22  ;;  %364 = vst.msk [vmem:[#allocation4 + $0x48] sm:$0xff] %vm360_vm9, %v355_v24  ;;  %vm1089_vm9 = vcmask 1048192   ;;  %vm1196_vm14 = vcmask 1048064  }
 0x12f   : > { %v613_v27 = vld [vmem:[#allocation4 + $0x30] sm:$0xff]  ;;  %971 = vst.msk [vmem:[#allocation3 + $0x20] sm:$0x1] %vm969_vm7, %v2612_v0  ;;  %972 = vst.msk [vmem:[#allocation3 + $0x30] sm:$0x1] %vm969_vm7, %v2612_v0 }
 0x130   : > { %872 = vmatmul.mubr.bf16.gmra.mrb[8].mxu0 %v613_v27  ;;  %v526_v28 = vpop.permute.xlu1 %525  ;;  %973 = vst.msk [vmem:[#allocation3 + $0x40] sm:$0x1] %vm969_vm7, %v2612_v0  ;;  %974 = vst.msk [vmem:[#allocation3 + $0x50] sm:$0x1] %vm969_vm7, %v2612_v0 }
 0x131   : > { %2500 = vmatpush3.bf16.msra.mxu0 %v821_v26  ;;  %v388_v29 = vpop.permute.xlu0 %387  ;;  %539 = vst.msk [vmem:[#allocation4 + $0x50] sm:$0xff] %vm531_vm10, %v526_v28 }
 0x132   : > { %540 = vst.msk [vmem:[#allocation4 + $0x58] sm:$0xff] %vm533_vm11, %v526_v28 }
 0x133   : > { %397 = vst.msk [vmem:[#allocation4 + $0x48] sm:$0xff] %vm393_vm12, %v388_v29  ;;  %vm1126_vm12 = vcmask 916736  }
 0x134   : > { %434 = vst.msk [vmem:[#allocation4 + $0x48] sm:$0xff] %vm426_vm13, %v421_v21  ;;  %v560_v30 = vpop.permute.xlu1 %559  ;;  %vm1160_vm13 = vcmask 523264  }
 0x135   : > { %v558_v31 = vpop.permute.xlu0 %557  ;;  %571 = vst.msk [vmem:[#allocation4 + $0x28] sm:$0xff] %vm569_vm15, %v560_v30 }
 0x136   : > { %570 = vst.msk [vmem:[#allocation4 + $0x10] sm:$0xff] %vm569_vm15, %v558_v31 }
 0x137   : > { %975 = vst.msk [vmem:[#allocation3 + $0x60] sm:$0x1] %vm969_vm7, %v2612_v0  ;;  %976 = vst.msk [vmem:[#allocation3 + $0x70] sm:$0x1] %vm969_vm7, %v2612_v0 }
 0x138   : > { %v593_v32 = vpop.permute.xlu1 %592  ;;  %v617_v34 = vld [vmem:[#allocation4 + $0x50] sm:$0xff]  ;;  %977 = vst.msk [vmem:[#allocation3 + $0x80] sm:$0x1] %vm969_vm7, %v2612_v0  ;;  %979 = vst.msk [vmem:[#allocation3 + $0x29] sm:$0x1] %vm969_vm7, %v2612_v0 }
 0x139   : > { %v591_v33 = vpop.permute.xlu0 %590  ;;  %604 = vst.msk [vmem:[#allocation4 + $0x28] sm:$0xff] %vm602_vm0, %v593_v32  ;;  %879 = vmatprep.mubr.bf16.mxu0 %v617_v34 }
 0x13a   : > { %603 = vst.msk [vmem:[#allocation4 + $0x10] sm:$0xff] %vm602_vm0, %v591_v33 }
 0x13b   : > { %v616_v35 = vld [vmem:[#allocation4 + $0x48] sm:$0xff]  ;;  %980 = vst.msk [vmem:[#allocation3 + $0x39] sm:$0x1] %vm969_vm7, %v2612_v0  ;;  %981 = vst.msk [vmem:[#allocation3 + $0x49] sm:$0x1] %vm969_vm7, %v2612_v0 }
 0x13c   : > { %880 = vmatmul.mubr.bf16.gmra.mrb[12].mxu0 %v616_v35  ;;  %v564_v36 = vpop.permute.xlu1 %563  ;;  %982 = vst.msk [vmem:[#allocation3 + $0x59] sm:$0x1] %vm969_vm7, %v2612_v0  ;;  %983 = vst.msk [vmem:[#allocation3 + $0x69] sm:$0x1] %vm969_vm7, %v2612_v0 }
 0x13d   : > { %v562_v37 = vpop.permute.xlu0 %561  ;;  %573 = vst.msk [vmem:[#allocation4 + $0x58] sm:$0xff] %vm569_vm15, %v564_v36 }
 0x13e   : > { %572 = vst.msk [vmem:[#allocation4 + $0x40] sm:$0xff] %vm569_vm15, %v562_v37  ;;  %vm1198_vm15 = vcmask 130048  }
 0x13f   : > { %984 = vst.msk [vmem:[#allocation3 + $0x79] sm:$0x1] %vm969_vm7, %v2612_v0  ;;  %985 = vst.msk [vmem:[#allocation3 + $0x89] sm:$0x1] %vm969_vm7, %v2612_v0  ;;  %vm2063_vm7 = vcmask 1040384  }
 0x140   : > { %v597_v38 = vpop.permute.xlu1 %596  ;;  %v612_v41 = vld [vmem:[#allocation4 + $0x28] sm:$0xff] }
 0x141   : > { %v595_v39 = vpop.permute.xlu0 %594  ;;  %v609_v40 = vld [vmem:[#allocation4 + $0x10] sm:$0xff]  ;;  %606 = vst.msk [vmem:[#allocation4 + $0x58] sm:$0xff] %vm602_vm0, %v597_v38 }
 0x142   : > { %605 = vst.msk [vmem:[#allocation4 + $0x40] sm:$0xff] %vm602_vm0, %v595_v39  ;;  %2501 = vmatprep.mubr.msk.bf16.mxu0 %vm806_vm1, %v609_v40  ;;  %vm1234_vm0 = vcmask 785536  }
 0x144   : > { %2502 = vmatmul.mubr.msk.bf16.vlgmr.msra.gmra.mrb[16].mxu0 %vm806_vm1, %v612_v41 }
 0x148   : > { %v618_v43 = vld [vmem:[#allocation4 + $0x58] sm:$0xff] }
 0x149   : > { %v615_v42 = vld [vmem:[#allocation4 + $0x40] sm:$0xff] }
 0x14a   : > { %2505 = vmatprep.mubr.msk.bf16.mxu0 %vm806_vm1, %v615_v42 }
 0x14c   : > { %2506 = vmatmul.mubr.msk.bf16.gmra.mrb[20].mxu0 %vm806_vm1, %v618_v43  ;;  %vm1268_vm1 = vcmask 1048320  }
 0x1eb   : > { %v2372_v44 = vpop.f32.mrb[0].mxu0 }
 0x1ec   : > { %v2373_v45 = vpop.f32.mrb[1].mxu0 }
 0x1ed   : > { %v2374_v46 = vadd.f32 %v2373_v45, %v2372_v44  ;;  %v2375_v47 = vpop.f32.mrb[2].mxu0 }
 0x1ee   : > { %v2376_v48 = vpop.f32.mrb[3].mxu0 }
 0x1ef   : > { %v2377_v49 = vadd.f32 %v2376_v48, %v2375_v47  ;;  %v858_v20 = vadd.f32 %v2374_v46, %v2273_v17 }
 0x1f1   : > { %v861_v26 = vadd.f32 %v2377_v49, %v2273_v17  ;;  %v2557_v49 = vld [vmem:[%s3384_s3 + $0x40] sm:$0xff]  }
 0x1f2   : > { %2407 = vmatprep.subr.bf16.mxu1 %v2557_v49  ;;  %v2582_v49 = vld [vmem:[%s3384_s3 + $0xe0] sm:$0xff]  }
 0x1f7   : > { %v2378_v50 = vpop.f32.mrb[4].mxu0 }
 0x1f8   : > { %v2379_v51 = vpop.f32.mrb[5].mxu0 }
 0x1f9   : > { %v2380_v52 = vadd.f32 %v2379_v51, %v2378_v50  ;;  %v2381_v53 = vpop.f32.mrb[6].mxu0  ;;  %v2558_v50 = vld [vmem:[%s3384_s3] sm:$0xff]   ;;  %v2559_v51 = vld [vmem:[%s3384_s3 + $0x48] sm:$0xff]  }
 0x1fa   : > { %v2382_v54 = vpop.f32.mrb[7].mxu0  ;;  %2408 = vmatpush3.bf16.msra.mxu1 %v2558_v50 }
 0x1fb   : > { %v2383_v55 = vadd.f32 %v2382_v54, %v2381_v53  ;;  %v866_v18 = vadd.f32 %v2380_v52, %v2273_v17  ;;  %v2560_v52 = vld [vmem:[%s3384_s3 + $0x8] sm:$0xff]   ;;  %2409 = vmatprep.subr.bf16.mxu1 %v2559_v51  ;;  %v2561_v53 = vld [vmem:[%s3384_s3 + $0x50] sm:$0xff]  }
 0x1fc   : > { %v2562_v54 = vld [vmem:[%s3384_s3 + $0x10] sm:$0xff]  }
 0x1fd   : > { %v869_v23 = vadd.f32 %v2383_v55, %v2273_v17  ;;  %v2563_v55 = vld [vmem:[%s3384_s3 + $0x58] sm:$0xff]  }
 0x1fe   : > { %2410 = vmatpush3.bf16.msra.mxu1 %v2560_v52 }
 0x1ff   : > { %2411 = vmatprep.subr.bf16.mxu1 %v2561_v53 }
 0x202   : > { %2412 = vmatpush3.bf16.msra.mxu1 %v2562_v54 }
 0x203   : > { %v2384_v56 = vpop.f32.mrb[8].mxu0  ;;  %2413 = vmatprep.subr.bf16.mxu1 %v2563_v55  ;;  %v2584_v55 = vld [vmem:[%s3384_s3 + $0xa0] sm:$0xff]  }
 0x204   : > { %v2385_v57 = vpop.f32.mrb[9].mxu0 }
 0x205   : > { %v2386_v58 = vadd.f32 %v2385_v57, %v2384_v56  ;;  %v2387_v59 = vpop.f32.mrb[10].mxu0  ;;  %v2564_v56 = vld [vmem:[%s3384_s3 + $0x18] sm:$0xff]   ;;  %v2565_v57 = vld [vmem:[%s3384_s3 + $0x60] sm:$0xff]  }
 0x206   : > { %v2388_v60 = vpop.f32.mrb[11].mxu0  ;;  %2414 = vmatpush3.bf16.msra.mxu1 %v2564_v56 }
 0x207   : > { %v2389_v61 = vadd.f32 %v2388_v60, %v2387_v59  ;;  %v874_v34 = vadd.f32 %v2386_v58, %v2273_v17  ;;  %v2566_v58 = vld [vmem:[%s3384_s3 + $0x20] sm:$0xff]   ;;  %2415 = vmatprep.subr.bf16.mxu1 %v2565_v57  ;;  %v2567_v59 = vld [vmem:[%s3384_s3 + $0x68] sm:$0xff]  }
 0x208   : > { %v2568_v60 = vld [vmem:[%s3384_s3 + $0x28] sm:$0xff]  }
 0x209   : > { %v877_v41 = vadd.f32 %v2389_v61, %v2273_v17  ;;  %v2569_v61 = vld [vmem:[%s3384_s3 + $0xc0] sm:$0xff]  }
 0x20a   : > { %2416 = vmatpush3.bf16.msra.mxu1 %v2566_v58  ;;  %2447 = vmatprep.subr.bf16.mxu0 %v2569_v61 }
 0x20b   : > { %2417 = vmatprep.subr.bf16.mxu1 %v2567_v59  ;;  %v2585_v59 = vld [vmem:[%s3384_s3 + $0xe8] sm:$0xff]  }
 0x20e   : > { %2418 = vmatpush3.bf16.msra.mxu1 %v2568_v60 }
 0x20f   : > { %v2390_v62 = vpop.f32.mrb[12].mxu0 }
 0x210   : > { %v2391_v63 = vpop.f32.mrb[13].mxu0 }
 0x211   : > { %v2392_v13 = vadd.f32 %v2391_v63, %v2390_v62  ;;  %v2393_v14 = vpop.f32.mrb[14].mxu0  ;;  %v2570_v62 = vld [vmem:[%s3384_s3 + $0x80] sm:$0xff]  }
 0x212   : > { %v2394_v15 = vpop.f32.mrb[15].mxu0  ;;  %2448 = vmatpush3.bf16.msra.mxu0 %v2570_v62 }
 0x213   : > { %v2395_v16 = vadd.f32 %v2394_v15, %v2393_v14  ;;  %v882_v0 = vadd.f32 %v2392_v13, %v2273_v17  ;;  %v2571_v14 = vld [vmem:[%s3384_s3 + $0x70] sm:$0xff]  }
 0x214   : > { %v2572_v15 = vld [vmem:[%s3384_s3 + $0x30] sm:$0xff]   ;;  %2419 = vmatprep.subr.bf16.mxu1 %v2571_v14 }
 0x215   : > { %v885_v37 = vadd.f32 %v2395_v16, %v2273_v17  ;;  %v2573_v16 = vld [vmem:[%s3384_s3 + $0xc8] sm:$0xff]   ;;  %2420 = vmatpush3.bf16.msra.mxu1 %v2572_v15 }
 0x216   : > { %2449 = vmatprep.subr.bf16.mxu0 %v2573_v16  ;;  %v2587_v15 = vld [vmem:[%s3384_s3 + $0xa8] sm:$0xff]   ;;  %v1318_v16 = vld [vmem:[#allocation3 + $0x92] sm:$0xff] }
 0x217   : > { %v2503_v19 = vpop.f32.mrb[16].mxu0 }
 0x218   : > { %v931_v21 = vadd.f32 %v2503_v19, %v866_v18  ;;  %v922_v22 = vpop.f32.mrb[17].mxu0  ;;  %v2574_v18 = vld [vmem:[%s3384_s3 + $0x88] sm:$0xff]   ;;  %v2575_v19 = vld [vmem:[%s3384_s3 + $0x78] sm:$0xff]  }
 0x219   : > { %v923_v24 = vadd.f32 %v922_v22, %v858_v20  ;;  %v2504_v25 = vpop.f32.mrb[18].mxu0  ;;  %v2576_v20 = vld [vmem:[%s3384_s3 + $0x38] sm:$0xff]   ;;  %2450 = vmatpush3.bf16.msra.mxu0 %v2574_v18  ;;  %2421 = vmatprep.subr.bf16.mxu1 %v2575_v19 }
 0x21a   : > { %v934_v27 = vadd.f32 %v2504_v25, %v869_v23  ;;  %v925_v28 = vpop.f32.mrb[19].mxu0  ;;  %v955_v32 = vmax.f32 %v931_v21, 0.0  ;;  %v2577_v21 = vld [vmem:[%s3384_s3 + $0xd0] sm:$0xff]   ;;  %v1098_v23 = vld [vmem:[#allocation3 + $0x2] sm:$0xff]  ;;  %2422 = vmatpush3.bf16.msra.mxu1 %v2576_v20 }
 0x21b   : > { %v953_v29 = vmax.f32 %v923_v24, 0.0  ;;  %v926_v30 = vadd.f32 %v925_v28, %v861_v26  ;;  %v1061_v24 = vld [vmem:[#allocation3 + $0x1] sm:$0xff]  ;;  %2451 = vmatprep.subr.bf16.mxu0 %v2577_v21  ;;  %v2588_v20 = vld [vmem:[%s3384_s3 + $0xf0] sm:$0xff]  }
 0x21c   : > { %v956_v38 = vmax.f32 %v934_v27, 0.0  ;;  %v1045_v25 = vld [vmem:[#allocation3] sm:$0xff] }
 0x21d   : > { %v954_v31 = vmax.f32 %v926_v30, 0.0  ;;  %1012 = vrot.lane.b32.xlu0 %v953_v29, %s2622_s13 }
 0x21f   : > { %1014 = vrot.lane.b32.xlu1 %v954_v31, %s2622_s13  ;;  %v2507_v33 = vpop.f32.mrb[20].mxu0 }
 0x220   : > { %v947_v35 = vadd.f32 %v2507_v33, %v882_v0  ;;  %v938_v36 = vpop.f32.mrb[21].mxu0 }
 0x221   : > { %v939_v39 = vadd.f32 %v938_v36, %v874_v34  ;;  %1016 = vrot.lane.b32.xlu0 %v955_v32, %s2622_s13  ;;  %v2508_v40 = vpop.f32.mrb[22].mxu0  ;;  %v2578_v32 = vld [vmem:[%s3384_s3 + $0x90] sm:$0xff]  }
 0x222   : > { %v950_v42 = vadd.f32 %v2508_v40, %v885_v37  ;;  %v941_v43 = vpop.f32.mrb[23].mxu0  ;;  %v959_v47 = vmax.f32 %v947_v35, 0.0  ;;  %v2579_v35 = vld [vmem:[%s3384_s3 + $0xd8] sm:$0xff]   ;;  %2452 = vmatpush3.bf16.msra.mxu0 %v2578_v32  ;;  %v2623_v40 = vmov 0  }
 0x223   : > { %v957_v44 = vmax.f32 %v939_v39, 0.0  ;;  %v942_v45 = vadd.f32 %v941_v43, %v877_v41  ;;  %1018 = vrot.lane.b32.xlu1 %v956_v38, %s2622_s13  ;;  %1902 = vmatprep.subr.bf16.mxu1 %v2623_v40 }
 0x224   : > { %v960_v48 = vmax.f32 %v950_v42, 0.0  ;;  %2453 = vmatprep.subr.bf16.mxu0 %v2579_v35  ;;  %v1285_v35 = vld [vmem:[#allocation3 + $0x91] sm:$0xff] }
 0x225   : > { %v958_v46 = vmax.f32 %v942_v45, 0.0  ;;  %1020 = vrot.lane.b32.xlu0 %v957_v44, %s2622_s13  ;;  %v2581_v44 = vld [vmem:[%s3384_s3 + $0x98] sm:$0xff]  }
 0x226   : > { %2454 = vmatpush3.bf16.msra.mxu0 %v2581_v44 }
 0x227   : > { %1022 = vrot.lane.b32.xlu1 %v958_v46, %s2622_s13  ;;  %2455 = vmatprep.subr.bf16.mxu0 %v2582_v49 }
 0x229   : > { %1024 = vrot.lane.b32.xlu0 %v959_v47, %s2622_s13 }
 0x22a   : > { %2456 = vmatpush3.bf16.msra.mxu0 %v2584_v55 }
 0x22b   : > { %1026 = vrot.lane.b32.xlu1 %v960_v48, %s2622_s13  ;;  %2457 = vmatprep.subr.bf16.mxu0 %v2585_v59  ;;  %v2594_v59 = vld [vmem:[%s3384_s3 + $0x128] sm:$0xff]  }
 0x22e   : > { %2458 = vmatpush3.bf16.msra.mxu0 %v2587_v15 }
 0x22f   : > { %2459 = vmatprep.subr.bf16.mxu0 %v2588_v20 }
 0x28f   : > { %v1013_v63 = vpop.permute.xlu0 %1012 }
 0x290   : > { %1037 = vst.msk [vmem:[#allocation3 + $0x11] sm:$0xff] %vm1036_vm8, %v1013_v63 }
 0x291   : > { %v1015_v13 = vpop.permute.xlu1 %1014 }
 0x292   : > { %1038 = vst.msk [vmem:[#allocation3 + $0x21] sm:$0xff] %vm1036_vm8, %v1015_v13 }
 0x293   : > { %v1017_v17 = vpop.permute.xlu0 %1016 }
 0x294   : > { %1039 = vst.msk [vmem:[#allocation3 + $0x31] sm:$0xff] %vm1036_vm8, %v1017_v17 }
 0x295   : > { %v1019_v22 = vpop.permute.xlu1 %1018 }
 0x296   : > { %1040 = vst.msk [vmem:[#allocation3 + $0x41] sm:$0xff] %vm1036_vm8, %v1019_v22  ;;  %v2590_v22 = vld [vmem:[%s3384_s3 + $0xb0] sm:$0xff]  }
 0x297   : > { %v1021_v26 = vpop.permute.xlu0 %1020  ;;  %v3067_v27 = vld [vmem:[#allocation3 + $0x12] sm:$0xff]  ;;  %2460 = vmatpush3.bf16.msra.mxu0 %v2590_v22  ;;  %v2597_v22 = vld [vmem:[%s3384_s3 + $0x140] sm:$0xff]  }
 0x298   : > { %v3069_v28 = vld [vmem:[#allocation3 + $0x11] sm:$0xff]  ;;  %1041 = vst.msk [vmem:[#allocation3 + $0x51] sm:$0xff] %vm1036_vm8, %v1021_v26  ;;  %v1106_v30 = vpack.c.bf16 %v3067_v27, %v1098_v23 }
 0x299   : > { %v1131_v29 = vld [vmem:[#allocation3 + $0x10] sm:$0xff]  ;;  %v1069_v31 = vpack.c.bf16 %v3069_v28, %v1061_v24  ;;  %v1023_v33 = vpop.permute.xlu1 %1022  ;;  %v1132_v34 = vld [vmem:[#allocation3 + $0x20] sm:$0xff] }
 0x29a   : > { %v1053_v0 = vpack.c.bf16 %v1131_v29, %v1045_v25  ;;  %1042 = vst.msk [vmem:[#allocation3 + $0x61] sm:$0xff] %vm1036_vm8, %v1023_v33  ;;  %1114 = vrot.lane.b32.xlu1 %v1106_v30, %s2614_s6  ;;  %v1100_v38 = vld [vmem:[#allocation3 + $0x22] sm:$0xff]  ;;  %v1139_v41 = vpack.c.bf16 %v1132_v34, %v1131_v29  ;;  %v2591_v25 = vld [vmem:[%s3384_s3 + $0xf8] sm:$0xff]  }
 0x29b   : > { %1077 = vrot.lane.b32.xlu0 %v1069_v31, %s2619_s15  ;;  %v1025_v36 = vpop.permute.xlu0 %1024  ;;  %v1133_v37 = vld [vmem:[#allocation3 + $0x30] sm:$0xff]  ;;  %v1063_v56 = vld [vmem:[#allocation3 + $0x21] sm:$0xff]  ;;  %v1214_v19 = vpack.c.bf16 %v1100_v38, %v3067_v27  ;;  %v2593_v27 = vld [vmem:[%s3384_s3 + $0xb8] sm:$0xff]   ;;  %2461 = vmatprep.subr.bf16.mxu0 %v2591_v25 }
 0x29c   : > { %1057 = vst.msk [vmem:[#allocation5] sm:$0xff] %vm961_vm4, %v1053_v0  ;;  %v3084_v39 = vld [vmem:[#allocation3 + $0x32] sm:$0xff]  ;;  %v3089_v43 = vpack.c.bf16 %v1133_v37, %v1132_v34  ;;  %v1176_v63 = vpack.c.bf16 %v1063_v56, %v3069_v28  ;;  %2462 = vmatpush3.bf16.msra.mxu0 %v2593_v27  ;;  %v2598_v27 = vld [vmem:[%s3384_s3 + $0x148] sm:$0xff]  }
 0x29d   : > { %1043 = vst.msk [vmem:[#allocation3 + $0x71] sm:$0xff] %vm1036_vm8, %v1025_v36  ;;  %v1107_v42 = vpack.c.bf16 %v3084_v39, %v1100_v38  ;;  %v1027_v45 = vpop.permute.xlu1 %1026  ;;  %v1134_v46 = vld [vmem:[#allocation3 + $0x40] sm:$0xff]  ;;  %v3096_v48 = vld [vmem:[#allocation3 + $0x31] sm:$0xff] }
 0x29e   : > { %1044 = vst.msk [vmem:[#allocation3 + $0x81] sm:$0xff] %vm1036_vm8, %v1027_v45  ;;  %v1140_v47 = vpack.c.bf16 %v1134_v46, %v1133_v37  ;;  %v3104_v50 = vld [vmem:[#allocation3 + $0x42] sm:$0xff]  ;;  %v1070_v57 = vpack.c.bf16 %v3096_v48, %v1063_v56  ;;  %vm2072_vm8 = vcmask 1041408  }
 0x29f   : > { %1147 = vrot.lane.b32.xlu0 %v1139_v41, %s2618_s14  ;;  %1058 = vst.msk [vmem:[#allocation5 + $0x30] sm:$0xff] %vm961_vm4, %v3089_v43  ;;  %1323 = vst.msk [vmem:[#allocation5 + $0x28] sm:$0xff] %vm961_vm4, %v1107_v42  ;;  %v3106_v51 = vld [vmem:[#allocation3 + $0x52] sm:$0xff]  ;;  %v1065_v21 = vld [vmem:[#allocation3 + $0x41] sm:$0xff]  ;;  %v1215_v33 = vpack.c.bf16 %v3104_v50, %v3084_v39 }
 0x2a0   : > { %v1135_v52 = vld [vmem:[#allocation3 + $0x50] sm:$0xff]  ;;  %1149 = vrot.lane.b32.xlu1 %v1140_v47, %s2618_s14  ;;  %v1108_v53 = vpack.c.bf16 %v3106_v51, %v3104_v50  ;;  %v1177_v32 = vpack.c.bf16 %v1065_v21, %v3096_v48 }
 0x2a1   : > { %v1249_v54 = vpack.c.bf16 %v1135_v52, %v1134_v46  ;;  %v1136_v58 = vld [vmem:[#allocation3 + $0x60] sm:$0xff]  ;;  %v1066_v17 = vld [vmem:[#allocation3 + $0x51] sm:$0xff] }
 0x2a2   : > { %1324 = vst.msk [vmem:[#allocation5 + $0x58] sm:$0xff] %vm961_vm4, %v1108_v53  ;;  %v1104_v61 = vld [vmem:[#allocation3 + $0x62] sm:$0xff]  ;;  %v1071_v24 = vpack.c.bf16 %v1066_v17, %v1065_v21  ;;  %v1141_v28 = vpack.c.bf16 %v1136_v58, %v1135_v52  ;;  %v2586_v46 = vld [vmem:[%s3384_s3 + $0x110] sm:$0xff]  }
 0x2a3   : > { %1116 = vrot.lane.b32.xlu0 %v1107_v42, %s2614_s6  ;;  %1059 = vst.msk [vmem:[#allocation5 + $0x60] sm:$0xff] %vm961_vm4, %v1249_v54  ;;  %v1067_v31 = vld [vmem:[#allocation3 + $0x61] sm:$0xff]  ;;  %v1216_v2 = vpack.c.bf16 %v1104_v61, %v3106_v51  ;;  %v2589_v51 = vld [vmem:[%s3384_s3 + $0x118] sm:$0xff]  }
 0x2a4   : > { %v1137_v60 = vld [vmem:[#allocation3 + $0x70] sm:$0xff]  ;;  %1079 = vrot.lane.b32.xlu1 %v1070_v57, %s2619_s15  ;;  %v1178_v1 = vpack.c.bf16 %v1067_v31, %v1066_v17 }
 0x2a5   : > { %v3121_v62 = vld [vmem:[#allocation3 + $0x72] sm:$0xff]  ;;  %v1250_v14 = vpack.c.bf16 %v1137_v60, %v1136_v58  ;;  %v1213_v18 = vld [vmem:[#allocation3 + $0x82] sm:$0xff] }
 0x2a6   : > { %v1109_v13 = vpack.c.bf16 %v3121_v62, %v1104_v61  ;;  %v1322_v23 = vpack.c.bf16 %v1318_v16, %v1213_v18  ;;  %v1138_v26 = vld [vmem:[#allocation3 + $0x80] sm:$0xff]  ;;  %v1068_v30 = vld [vmem:[#allocation3 + $0x71] sm:$0xff]  ;;  %v1217_v5 = vpack.c.bf16 %v1213_v18, %v3121_v62 }
 0x2a7   : > { %1184 = vrot.lane.b32.xlu0 %v1176_v63, %s2621_s21  ;;  %1060 = vst.msk [vmem:[#allocation5 + $0x90] sm:$0xff] %vm961_vm4, %v1250_v14  ;;  %v1142_v29 = vpack.c.bf16 %v1138_v26, %v1137_v60  ;;  %v1072_v0 = vpack.c.bf16 %v1068_v30, %v1067_v31 }
 0x2a8   : > { %1325 = vst.msk [vmem:[#allocation5 + $0x88] sm:$0xff] %vm961_vm4, %v1109_v13  ;;  %1222 = vrot.lane.b32.xlu1 %v1214_v19, %s2624_s25  ;;  %1326 = vst.msk [vmem:[#allocation5 + $0xb8] sm:$0xff] %vm961_vm4, %v1322_v23  ;;  %vm1347_vm4 = vcmask 917120   ;;  %v2596_v19 = vld [vmem:[%s3384_s3 + $0x138] sm:$0xff]  }
 0x2ab   : > { %1081 = vrot.lane.b32.xlu0 %v1071_v24, %s2619_s15 }
 0x2ac   : > { %1118 = vrot.lane.b32.xlu1 %v1108_v53, %s2614_s6 }
 0x2af   : > { %1151 = vrot.lane.b32.xlu0 %v1141_v28, %s2618_s14 }
 0x2b0   : > { %1153 = vrot.lane.b32.xlu1 %v1142_v29, %s2618_s14 }
 0x2b3   : > { %1256 = vrot.lane.b32.xlu0 %v3089_v43, %s2625_s30  ;;  %v2583_v43 = vld [vmem:[%s3384_s3 + $0x108] sm:$0xff]  }
 0x2b4   : > { %1083 = vrot.lane.b32.xlu1 %v1072_v0, %s2619_s15 }
 0x2b7   : > { %1120 = vrot.lane.b32.xlu0 %v1109_v13, %s2614_s6  ;;  %v2595_v13 = vld [vmem:[%s3384_s3 + $0x130] sm:$0xff]  }
 0x2b8   : > { %1335 = vrot.lane.b32.xlu1 %v1327_v4, %s2619_s15  ;;  %v1175_v4 = vld [vmem:[#allocation3 + $0x81] sm:$0xff] }
 0x2b9   : > { %v1179_v34 = vpack.c.bf16 %v1175_v4, %v1068_v30  ;;  %v1289_v36 = vpack.c.bf16 %v1285_v35, %v1175_v4  ;;  %v2599_v30 = vld [vmem:[%s3384_s3 + $0x150] sm:$0xff]  }
 0x2bb   : > { %1186 = vrot.lane.b32.xlu0 %v1177_v32, %s2621_s21  ;;  %v2600_v32 = vld [vmem:[%s3384_s3 + $0x158] sm:$0xff]  }
 0x2bc   : > { %1294 = vrot.lane.b32.xlu1 %v1070_v57, %s2626_s8 }
 0x2bf   : > { %1224 = vrot.lane.b32.xlu0 %v1215_v33, %s2624_s25 }
 0x2c0   : > { %1258 = vrot.lane.b32.xlu1 %v1249_v54, %s2625_s30  ;;  %v2592_v54 = vld [vmem:[%s3384_s3 + $0x120] sm:$0xff]  }
 0x2c3   : > { %1337 = vrot.lane.b32.xlu0 %v1328_v7, %s2619_s15  ;;  %v1251_v7 = vpack.c.bf16 %v1247_v3, %v1138_v26 }
 0x2c4   : > { %1188 = vrot.lane.b32.xlu1 %v1178_v1, %s2621_s21 }
 0x2c7   : > { %1296 = vrot.lane.b32.xlu0 %v1071_v24, %s2626_s8 }
 0x2c8   : > { %1226 = vrot.lane.b32.xlu1 %v1216_v2, %s2624_s25 }
 0x2cb   : > { %1260 = vrot.lane.b32.xlu0 %v1250_v14, %s2625_s30 }
 0x2cc   : > { %1339 = vrot.lane.b32.xlu1 %v1329_v11, %s2619_s15 }
 0x2cf   : > { %1190 = vrot.lane.b32.xlu0 %v1179_v34, %s2621_s21  ;;  %v2601_v34 = vld [vmem:[%s3384_s3 + $0x160] sm:$0xff]  }
 0x2d0   : > { %1298 = vrot.lane.b32.xlu1 %v1072_v0, %s2626_s8 }
 0x2d3   : > { %1228 = vrot.lane.b32.xlu0 %v1217_v5, %s2624_s25 }
 0x2d4   : > { %1262 = vrot.lane.b32.xlu1 %v1251_v7, %s2625_s30  ;;  %v2602_v7 = vld [vmem:[%s3384_s3 + $0x168] sm:$0xff]  }
 0x2d7   : > { %1341 = vrot.lane.b32.xlu0 %v1330_v12, %s2619_s15  ;;  %v2580_v12 = vld [vmem:[%s3384_s3 + $0x100] sm:$0xff]  }
 0x2d8   : > { %1300 = vrot.lane.b32.xlu1 %v1289_v36, %s2626_s8 }
 0x30c   : > { %v1115_v6 = vpop.permute.xlu1 %1114 }
 0x30d   : > { %v1078_v8 = vpop.permute.xlu0 %1077 }
 0x30e   : > { %1090 = vst.msk [vmem:[#allocation5] sm:$0xff] %vm1089_vm9, %v1078_v8 }
 0x30f   : > { %1091 = vst.msk [vmem:[#allocation5 + $0x8] sm:$0xff] %vm428_vm6, %v1078_v8 }
 0x310   : > { %1127 = vst.msk [vmem:[#allocation5 + $0x8] sm:$0xff] %vm1126_vm12, %v1115_v6  ;;  %v2603_v6 = vld [vmem:[%s3384_s3 + $0x170] sm:$0xff]  }
 0x311   : > { %v1148_v11 = vpop.permute.xlu0 %1147 }
 0x312   : > { %1159 = vst.msk [vmem:[#allocation5 + $0x8] sm:$0xff] %vm531_vm10, %v1148_v11  ;;  %v1150_v37 = vpop.permute.xlu1 %1149 }
 0x313   : > { %1161 = vst.msk [vmem:[#allocation5 + $0x10] sm:$0xff] %vm1160_vm13, %v1148_v11  ;;  %1163 = vst.msk [vmem:[#allocation5 + $0x40] sm:$0xff] %vm1160_vm13, %v1150_v37 }
 0x315   : > { %v1117_v9 = vpop.permute.xlu0 %1116  ;;  %v1352_v41 = vld [vmem:[#allocation5] sm:$0xff] }
 0x316   : > { %v1080_v10 = vpop.permute.xlu1 %1079 }
 0x317   : > { %1092 = vst.msk [vmem:[#allocation5 + $0x30] sm:$0xff] %vm1089_vm9, %v1080_v10 }
 0x318   : > { %1093 = vst.msk [vmem:[#allocation5 + $0x38] sm:$0xff] %vm428_vm6, %v1080_v10 }
 0x319   : > { %1128 = vst.msk [vmem:[#allocation5 + $0x38] sm:$0xff] %vm1126_vm12, %v1117_v9  ;;  %v1185_v38 = vpop.permute.xlu0 %1184  ;;  %v1353_v39 = vld [vmem:[#allocation5 + $0x8] sm:$0xff] }
 0x31a   : > { %1162 = vst.msk [vmem:[#allocation5 + $0x38] sm:$0xff] %vm531_vm10, %v1150_v37  ;;  %1804 = vmatprep.mubr.bf16.mxu1 %v1353_v39  ;;  %v1223_v42 = vpop.permute.xlu1 %1222 }
 0x31b   : > { %1197 = vst.msk [vmem:[#allocation5 + $0x10] sm:$0xff] %vm1196_vm14, %v1185_v38  ;;  %1805 = vmatmul.mubr.bf16.vlgmr.msra.gmra.mrb[0].mxu1 %v1352_v41 }
 0x31c   : > { %1199 = vst.msk [vmem:[#allocation5 + $0x18] sm:$0xff] %vm1198_vm15, %v1185_v38  ;;  %1903 = vmatpush1.bf16.msra.mxu1 %v2580_v12 }
 0x31d   : > { %1235 = vst.msk [vmem:[#allocation5 + $0x18] sm:$0xff] %vm1234_vm0, %v1223_v42  ;;  %v1082_v44 = vpop.permute.xlu0 %1081  ;;  %1904 = vmatprep.subr.bf16.mxu1 %v2623_v40 }
 0x31e   : > { %1094 = vst.msk [vmem:[#allocation5 + $0x60] sm:$0xff] %vm1089_vm9, %v1082_v44  ;;  %v1119_v45 = vpop.permute.xlu1 %1118  ;;  %v1358_v49 = vld [vmem:[#allocation5 + $0x30] sm:$0xff] }
 0x31f   : > { %1095 = vst.msk [vmem:[#allocation5 + $0x68] sm:$0xff] %vm428_vm6, %v1082_v44 }
 0x320   : > { %1129 = vst.msk [vmem:[#allocation5 + $0x68] sm:$0xff] %vm1126_vm12, %v1119_v45  ;;  %1905 = vmatpush1.bf16.msra.mxu1 %v2583_v43 }
 0x321   : > { %v1152_v47 = vpop.permute.xlu0 %1151  ;;  %v1359_v48 = vld [vmem:[#allocation5 + $0x38] sm:$0xff]  ;;  %1906 = vmatprep.subr.bf16.mxu1 %v2623_v40 }
 0x322   : > { %1164 = vst.msk [vmem:[#allocation5 + $0x68] sm:$0xff] %vm531_vm10, %v1152_v47  ;;  %1812 = vmatprep.mubr.bf16.mxu1 %v1359_v48  ;;  %v1154_v50 = vpop.permute.xlu1 %1153  ;;  %v1354_v62 = vld [vmem:[#allocation5 + $0x10] sm:$0xff] }
 0x323   : > { %1165 = vst.msk [vmem:[#allocation5 + $0x70] sm:$0xff] %vm1160_vm13, %v1152_v47  ;;  %1813 = vmatmul.mubr.bf16.gmra.mrb[4].mxu1 %v1358_v49  ;;  %1167 = vst.msk [vmem:[#allocation5 + $0xa0] sm:$0xff] %vm1160_vm13, %v1154_v50 }
 0x324   : > { %1907 = vmatpush1.bf16.msra.mxu1 %v2586_v46 }
 0x325   : > { %v1257_v52 = vpop.permute.xlu0 %1256  ;;  %1908 = vmatprep.subr.bf16.mxu1 %v2623_v40  ;;  %v1364_v57 = vld [vmem:[#allocation5 + $0x60] sm:$0xff] }
 0x326   : > { %1269 = vst.msk [vmem:[#allocation5 + $0x18] sm:$0xff] %vm1268_vm1, %v1257_v52  ;;  %v1084_v53 = vpop.permute.xlu1 %1083 }
 0x327   : > { %1271 = vst.msk [vmem:[#allocation5 + $0x20] sm:$0xff] %vm1270_vm3, %v1257_v52 }
 0x328   : > { %1096 = vst.msk [vmem:[#allocation5 + $0x90] sm:$0xff] %vm1089_vm9, %v1084_v53  ;;  %1909 = vmatpush1.bf16.msra.mxu1 %v2589_v51  ;;  %vm2081_vm9 = vcmask 1042432  }
 0x329   : > { %1097 = vst.msk [vmem:[#allocation5 + $0x98] sm:$0xff] %vm428_vm6, %v1084_v53  ;;  %v1121_v55 = vpop.permute.xlu0 %1120  ;;  %v1365_v56 = vld [vmem:[#allocation5 + $0x68] sm:$0xff]  ;;  %1910 = vmatprep.subr.bf16.mxu1 %v2623_v40 }
 0x32a   : > { %1130 = vst.msk [vmem:[#allocation5 + $0x98] sm:$0xff] %vm1126_vm12, %v1121_v55  ;;  %1820 = vmatprep.mubr.bf16.mxu1 %v1365_v56  ;;  %v1336_v58 = vpop.permute.xlu1 %1335  ;;  %v2301_v55 = vld [vmem:[%s3385_s4] ss:$0 sm:$0xff]  ;;  %vm2171_vm12 = vcmask 1041409  }
 0x32b   : > { %1166 = vst.msk [vmem:[#allocation5 + $0x98] sm:$0xff] %vm531_vm10, %v1154_v50  ;;  %1821 = vmatmul.mubr.bf16.gmra.mrb[8].mxu1 %v1364_v57  ;;  %vm1759_vm10 = vcmask 916480  }
 0x32c   : > { %1911 = vmatpush1.bf16.msra.mxu1 %v2592_v54  ;;  %1348 = vst.msk [vmem:[#allocation5 + $0x28] sm:$0xff] %vm1347_vm4, %v1336_v58 }
 0x32d   : > { %v1187_v60 = vpop.permute.xlu0 %1186  ;;  %v1355_v61 = vld [vmem:[#allocation5 + $0x18] sm:$0xff]  ;;  %1912 = vmatprep.subr.bf16.mxu1 %v2623_v40 }
 0x32e   : > { %1200 = vst.msk [vmem:[#allocation5 + $0x40] sm:$0xff] %vm1196_vm14, %v1187_v60  ;;  %1869 = vmatprep.mubr.bf16.mxu0 %v1355_v61  ;;  %v1295_v63 = vpop.permute.xlu1 %1294 }
 0x32f   : > { %1201 = vst.msk [vmem:[#allocation5 + $0x48] sm:$0xff] %vm1198_vm15, %v1187_v60  ;;  %1870 = vmatmul.mubr.bf16.vlgmr.msra.gmra.mrb[24].mxu0 %v1354_v62  ;;  %v1370_v18 = vld [vmem:[#allocation5 + $0x90] sm:$0xff] }
 0x330   : > { %1913 = vmatpush1.bf16.msra.mxu1 %v2594_v59  ;;  %1307 = vst.msk [vmem:[#allocation5 + $0x20] sm:$0xff] %vm1306_vm5, %v1295_v63 }
 0x331   : > { %v1225_v14 = vpop.permute.xlu0 %1224  ;;  %1914 = vmatprep.subr.bf16.mxu1 %v2623_v40 }
 0x332   : > { %1236 = vst.msk [vmem:[#allocation5 + $0x48] sm:$0xff] %vm1234_vm0, %v1225_v14  ;;  %v1371_v15 = vld [vmem:[#allocation5 + $0x98] sm:$0xff]  ;;  %v1259_v16 = vpop.permute.xlu1 %1258 }
 0x333   : > { %1828 = vmatprep.mubr.bf16.mxu1 %v1371_v15  ;;  %v1357_v17 = vld [vmem:[#allocation5 + $0x28] sm:$0xff]  ;;  %1272 = vst.msk [vmem:[#allocation5 + $0x48] sm:$0xff] %vm1268_vm1, %v1259_v16 }
 0x334   : > { %1915 = vmatpush1.bf16.msra.mxu1 %v2595_v13  ;;  %1273 = vst.msk [vmem:[#allocation5 + $0x50] sm:$0xff] %vm1270_vm3, %v1259_v16 }
 0x335   : > { %1829 = vmatmul.mubr.bf16.gmra.mrb[12].mxu1 %v1370_v18  ;;  %v1338_v20 = vpop.permute.xlu0 %1337  ;;  %1916 = vmatprep.subr.bf16.mxu1 %v2623_v40  ;;  %v1360_v26 = vld [vmem:[#allocation5 + $0x40] sm:$0xff] }
 0x336   : > { %1349 = vst.msk [vmem:[#allocation5 + $0x58] sm:$0xff] %vm1347_vm4, %v1338_v20  ;;  %2349 = vmatprep.mubr.msk.bf16.mxu1 %vm1759_vm10, %v1357_v17  ;;  %v1189_v21 = vpop.permute.xlu1 %1188 }
 0x337   : > { %1202 = vst.msk [vmem:[#allocation5 + $0x70] sm:$0xff] %vm1196_vm14, %v1189_v21  ;;  %v1356_v11 = vld [vmem:[#allocation5 + $0x20] sm:$0xff] }
 0x338   : > { %1917 = vmatpush1.bf16.msra.mxu1 %v2596_v19  ;;  %1203 = vst.msk [vmem:[#allocation5 + $0x78] sm:$0xff] %vm1198_vm15, %v1189_v21 }
 0x339   : > { %v1297_v23 = vpop.permute.xlu0 %1296  ;;  %1918 = vmatprep.subr.bf16.mxu1 %v2623_v40 }
 0x33a   : > { %1308 = vst.msk [vmem:[#allocation5 + $0x50] sm:$0xff] %vm1306_vm5, %v1297_v23  ;;  %v1227_v24 = vpop.permute.xlu1 %1226  ;;  %v1361_v25 = vld [vmem:[#allocation5 + $0x48] sm:$0xff] }
 0x33b   : > { %1237 = vst.msk [vmem:[#allocation5 + $0x78] sm:$0xff] %vm1234_vm0, %v1227_v24  ;;  %1877 = vmatprep.mubr.bf16.mxu0 %v1361_v25 }
 0x33c   : > { %1919 = vmatpush1.bf16.msra.mxu1 %v2597_v22  ;;  %1878 = vmatmul.mubr.bf16.gmra.mrb[28].mxu0 %v1360_v26 }
 0x33d   : > { %v1261_v28 = vpop.permute.xlu0 %1260  ;;  %1920 = vmatprep.subr.bf16.mxu1 %v2623_v40  ;;  %v1363_v8 = vld [vmem:[#allocation5 + $0x58] sm:$0xff] }
 0x33e   : > { %1274 = vst.msk [vmem:[#allocation5 + $0x78] sm:$0xff] %vm1268_vm1, %v1261_v28  ;;  %v1340_v29 = vpop.permute.xlu1 %1339  ;;  %v1366_v2 = vld [vmem:[#allocation5 + $0x70] sm:$0xff] }
 0x33f   : > { %1275 = vst.msk [vmem:[#allocation5 + $0x80] sm:$0xff] %vm1270_vm3, %v1261_v28 }
 0x340   : > { %1921 = vmatpush1.bf16.msra.mxu1 %v2598_v27  ;;  %1350 = vst.msk [vmem:[#allocation5 + $0x88] sm:$0xff] %vm1347_vm4, %v1340_v29 }
 0x341   : > { %v1191_v31 = vpop.permute.xlu0 %1190  ;;  %1922 = vmatprep.subr.bf16.mxu1 %v2623_v40  ;;  %v1362_v9 = vld [vmem:[#allocation5 + $0x50] sm:$0xff] }
 0x342   : > { %1204 = vst.msk [vmem:[#allocation5 + $0xa0] sm:$0xff] %vm1196_vm14, %v1191_v31  ;;  %v1299_v0 = vpop.permute.xlu1 %1298  ;;  %vm2174_vm14 = vcmask 1042434  }
 0x343   : > { %1205 = vst.msk [vmem:[#allocation5 + $0xa8] sm:$0xff] %vm1198_vm15, %v1191_v31 }
 0x344   : > { %1923 = vmatpush1.bf16.msra.mxu1 %v2599_v30  ;;  %1309 = vst.msk [vmem:[#allocation5 + $0x80] sm:$0xff] %vm1306_vm5, %v1299_v0 }
 0x345   : > { %v1229_v33 = vpop.permute.xlu0 %1228  ;;  %v1367_v1 = vld [vmem:[#allocation5 + $0x78] sm:$0xff]  ;;  %1924 = vmatprep.subr.bf16.mxu1 %v2623_v40 }
 0x346   : > { %1238 = vst.msk [vmem:[#allocation5 + $0xa8] sm:$0xff] %vm1234_vm0, %v1229_v33  ;;  %1885 = vmatprep.mubr.bf16.mxu0 %v1367_v1  ;;  %v1263_v4 = vpop.permute.xlu1 %1262  ;;  %vm2177_vm0 = vcmask 1043459  }
 0x347   : > { %1886 = vmatmul.mubr.bf16.gmra.mrb[32].mxu0 %v1366_v2  ;;  %1276 = vst.msk [vmem:[#allocation5 + $0xa8] sm:$0xff] %vm1268_vm1, %v1263_v4  ;;  %v1369_v37 = vld [vmem:[#allocation5 + $0x88] sm:$0xff] }
 0x348   : > { %1925 = vmatpush1.bf16.msra.mxu1 %v2600_v32  ;;  %1277 = vst.msk [vmem:[#allocation5 + $0xb0] sm:$0xff] %vm1270_vm3, %v1263_v4 }
 0x349   : > { %1926 = vmatprep.subr.bf16.mxu1 %v2623_v40  ;;  %v1342_v3 = vpop.permute.xlu0 %1341  ;;  %v1372_v36 = vld [vmem:[#allocation5 + $0xa0] sm:$0xff] }
 0x34a   : > { %1351 = vst.msk [vmem:[#allocation5 + $0xb8] sm:$0xff] %vm1347_vm4, %v1342_v3  ;;  %v1301_v5 = vpop.permute.xlu1 %1300 }
 0x34b   : > { %1310 = vst.msk [vmem:[#allocation5 + $0xb0] sm:$0xff] %vm1306_vm5, %v1301_v5  ;;  %v1368_v12 = vld [vmem:[#allocation5 + $0x80] sm:$0xff] }
 0x34c   : > { %1927 = vmatpush1.bf16.msra.mxu1 %v2601_v34 }
 0x34d   : > { %1928 = vmatprep.subr.bf16.mxu1 %v2623_v40 }
 0x34e   : > { %v1373_v35 = vld [vmem:[#allocation5 + $0xa8] sm:$0xff] }
 0x34f   : > { %1893 = vmatprep.mubr.bf16.mxu0 %v1373_v35 }
 0x350   : > { %1929 = vmatpush1.bf16.msra.mxu1 %v2602_v7  ;;  %1894 = vmatmul.mubr.bf16.gmra.mrb[36].mxu0 %v1372_v36 }
 0x351   : > { %1930 = vmatprep.subr.bf16.mxu1 %v2623_v40  ;;  %v1375_v10 = vld [vmem:[#allocation5 + $0xb8] sm:$0xff] }
 0x352   : > { %v1374_v38 = vld [vmem:[#allocation5 + $0xb0] sm:$0xff] }
 0x354   : > { %1931 = vmatpush1.bf16.msra.mxu1 %v2603_v6 }
 0x357   : > { %1935 = vmatmul.mubr.bf16.vlgmr.msra.gmra.mrb[16].mxu1 %v1356_v11 }
 0x358   : > { %2350 = vmatprep.mubr.msk.bf16.mxu1 %vm1759_vm10, %v1363_v8 }
 0x35f   : > { %1943 = vmatmul.mubr.bf16.gmra.mrb[20].mxu1 %v1362_v9 }
 0x360   : > { %2351 = vmatprep.mubr.msk.bf16.mxu1 %vm1759_vm10, %v1369_v37 }
 0x367   : > { %1951 = vmatmul.mubr.bf16.gmra.mrb[24].mxu1 %v1368_v12 }
 0x368   : > { %2352 = vmatprep.mubr.msk.bf16.mxu1 %vm1759_vm10, %v1375_v10 }
 0x36f   : > { %1959 = vmatmul.mubr.bf16.gmra.mrb[28].mxu1 %v1374_v38 }
 0x3ee   : > { %v2423_v39 = vpop.f32.mrb[0].mxu1 }
 0x3ef   : > { %v2424_v40 = vpop.f32.mrb[1].mxu1 }
 0x3f0   : > { %v2425_v41 = vadd.f32 %v2424_v40, %v2423_v39  ;;  %v2426_v42 = vpop.f32.mrb[2].mxu1 }
 0x3f1   : > { %v2427_v43 = vpop.f32.mrb[3].mxu1 }
 0x3f2   : > { %v2428_v44 = vadd.f32 %v2427_v43, %v2426_v42  ;;  %v1807_v60 = vadd.f32 %v2425_v41, %v2301_v55 }
 0x3f4   : > { %v1810_v13 = vadd.f32 %v2428_v44, %v2301_v55 }
 0x3f6   : > { %v2429_v45 = vpop.f32.mrb[4].mxu1 }
 0x3f7   : > { %v2430_v46 = vpop.f32.mrb[5].mxu1 }
 0x3f8   : > { %v2431_v47 = vadd.f32 %v2430_v46, %v2429_v45  ;;  %v2432_v48 = vpop.f32.mrb[6].mxu1 }
 0x3f9   : > { %v2433_v49 = vpop.f32.mrb[7].mxu1 }
 0x3fa   : > { %v2434_v50 = vadd.f32 %v2433_v49, %v2432_v48  ;;  %v1815_v25 = vadd.f32 %v2431_v47, %v2301_v55 }
 0x3fc   : > { %v1818_v29 = vadd.f32 %v2434_v50, %v2301_v55 }
 0x3fe   : > { %v2435_v51 = vpop.f32.mrb[8].mxu1 }
 0x3ff   : > { %v2436_v52 = vpop.f32.mrb[9].mxu1 }
 0x400   : > { %v2437_v53 = vadd.f32 %v2436_v52, %v2435_v51  ;;  %v2438_v54 = vpop.f32.mrb[10].mxu1 }
 0x401   : > { %v2439_v56 = vpop.f32.mrb[11].mxu1 }
 0x402   : > { %v2440_v57 = vadd.f32 %v2439_v56, %v2438_v54  ;;  %v2463_v58 = vpop.f32.mrb[24].mxu0  ;;  %v1823_v1 = vadd.f32 %v2437_v53, %v2301_v55 }
 0x403   : > { %v2464_v59 = vpop.f32.mrb[25].mxu0 }
 0x404   : > { %v2465_v61 = vadd.f32 %v2464_v59, %v2463_v58  ;;  %v2466_v62 = vpop.f32.mrb[26].mxu0  ;;  %v1826_v3 = vadd.f32 %v2440_v57, %v2301_v55 }
 0x405   : > { %v2467_v63 = vpop.f32.mrb[27].mxu0 }
 0x406   : > { %v2468_v14 = vadd.f32 %v2467_v63, %v2466_v62  ;;  %v1872_v15 = vadd.f32 %v2465_v61, %v1807_v60 }
 0x408   : > { %v2441_v16 = vpop.f32.mrb[12].mxu1  ;;  %v1875_v17 = vadd.f32 %v2468_v14, %v1810_v13 }
 0x409   : > { %v2442_v18 = vpop.f32.mrb[13].mxu1 }
 0x40a   : > { %v2443_v19 = vadd.f32 %v2442_v18, %v2441_v16  ;;  %v2444_v20 = vpop.f32.mrb[14].mxu1 }
 0x40b   : > { %v2445_v21 = vpop.f32.mrb[15].mxu1 }
 0x40c   : > { %v2446_v22 = vadd.f32 %v2445_v21, %v2444_v20  ;;  %v1831_v8 = vadd.f32 %v2443_v19, %v2301_v55 }
 0x40e   : > { %v1834_v10 = vadd.f32 %v2446_v22, %v2301_v55 }
 0x40f   : > { %v2469_v23 = vpop.f32.mrb[28].mxu0 }
 0x410   : > { %v2470_v24 = vpop.f32.mrb[29].mxu0 }
 0x411   : > { %v2471_v26 = vadd.f32 %v2470_v24, %v2469_v23  ;;  %v2472_v27 = vpop.f32.mrb[30].mxu0 }
 0x412   : > { %v2473_v28 = vpop.f32.mrb[31].mxu0 }
 0x413   : > { %v2474_v30 = vadd.f32 %v2473_v28, %v2472_v27  ;;  %v1880_v31 = vadd.f32 %v2471_v26, %v1815_v25 }
 0x415   : > { %v1883_v0 = vadd.f32 %v2474_v30, %v1818_v29 }
 0x41a   : > { %v2475_v32 = vpop.f32.mrb[32].mxu0 }
 0x41b   : > { %v2476_v33 = vpop.f32.mrb[33].mxu0 }
 0x41c   : > { %v2477_v2 = vadd.f32 %v2476_v33, %v2475_v32  ;;  %v2478_v4 = vpop.f32.mrb[34].mxu0 }
 0x41d   : > { %v2479_v34 = vpop.f32.mrb[35].mxu0 }
 0x41e   : > { %v2480_v5 = vadd.f32 %v2479_v34, %v2478_v4  ;;  %v1888_v7 = vadd.f32 %v2477_v2, %v1823_v1 }
 0x420   : > { %v1891_v35 = vadd.f32 %v2480_v5, %v1826_v3 }
 0x423   : > { %v2481_v36 = vpop.f32.mrb[36].mxu0 }
 0x424   : > { %v2482_v6 = vpop.f32.mrb[37].mxu0 }
 0x425   : > { %v2483_v11 = vadd.f32 %v2482_v6, %v2481_v36  ;;  %v2484_v37 = vpop.f32.mrb[38].mxu0 }
 0x426   : > { %v2485_v9 = vpop.f32.mrb[39].mxu0 }
 0x427   : > { %v2486_v12 = vadd.f32 %v2485_v9, %v2484_v37  ;;  %v3299_v38 = vadd.f32 %v2483_v11, %v1831_v8 }
 0x429   : > { %v3301_v40 = vadd.f32 %v2486_v12, %v1834_v10 }
 0x42a   : > { %v1936_v39 = vpop.f32.mrb[16].mxu1 }
 0x42b   : > { %v1937_v41 = vadd.f32 %v1936_v39, %v1872_v15  ;;  %v1938_v42 = vpop.f32.mrb[17].mxu1 }
 0x42c   : > { %v1939_v43 = vpop.f32.mrb[18].mxu1 }
 0x42d   : > { %v1967_v44 = vmax.f32 %v1937_v41, 0.0  ;;  %v1940_v45 = vadd.f32 %v1939_v43, %v1875_v17  ;;  %v1941_v46 = vpop.f32.mrb[19].mxu1 }
 0x42f   : > { %v1983_v47 = vrot.slane %v1967_v44, 1  ;;  %v1968_v48 = vmax.f32 %v1940_v45, 0.0 }
 0x431   : > { %v1999_v49 = vmax.f32 %v1967_v44, %v1983_v47  ;;  %v1984_v50 = vrot.slane %v1968_v48, 1 }
 0x432   : > { %v1944_v51 = vpop.f32.mrb[20].mxu1 }
 0x433   : > { %v2015_v52 = vrot.slane %v1999_v49, 1  ;;  %v2031_v53 = vrot.slane %v1999_v49, 2  ;;  %v2000_v54 = vmax.f32 %v1968_v48, %v1984_v50  ;;  %v1945_v55 = vadd.f32 %v1944_v51, %v1880_v31  ;;  %v1946_v56 = vpop.f32.mrb[21].mxu1 }
 0x434   : > { %v1947_v57 = vpop.f32.mrb[22].mxu1  ;;  %v2047_v63 = vrot.slane %v1999_v49, 3 }
 0x435   : > { %v2016_v58 = vrot.slane %v2000_v54, 1  ;;  %v2032_v59 = vrot.slane %v2000_v54, 2  ;;  %v1969_v60 = vmax.f32 %v1945_v55, 0.0  ;;  %v1948_v61 = vadd.f32 %v1947_v57, %v1883_v0  ;;  %v1949_v62 = vpop.f32.mrb[23].mxu1 }
 0x436   : > { %v2048_v13 = vrot.slane %v2000_v54, 3  ;;  %v2064_v14 = vsel %vm2063_vm7, %v1999_v49, %v2015_v52 }
 0x437   : > { %v1985_v15 = vrot.slane %v1969_v60, 1  ;;  %v1970_v16 = vmax.f32 %v1948_v61, 0.0  ;;  %v2065_v17 = vsel %vm2063_vm7, %v2000_v54, %v2016_v58  ;;  %v2073_v18 = vsel %vm2072_vm8, %v2064_v14, %v2031_v53 }
 0x438   : > { %v2074_v19 = vsel %vm2072_vm8, %v2065_v17, %v2032_v59  ;;  %v2082_v22 = vsel %vm2081_vm9, %v2073_v18, %v2047_v63 }
 0x439   : > { %v2001_v20 = vmax.f32 %v1969_v60, %v1985_v15  ;;  %v1986_v21 = vrot.slane %v1970_v16, 1  ;;  %v2083_v23 = vsel %vm2081_vm9, %v2074_v19, %v2048_v13 }
 0x43a   : > { %v1952_v24 = vpop.f32.mrb[24].mxu1  ;;  %v3309_v25 = vmax.f32 %v2082_v22, %v2083_v23 }
 0x43b   : > { %v2017_v26 = vrot.slane %v2001_v20, 1  ;;  %v2033_v27 = vrot.slane %v2001_v20, 2  ;;  %v2002_v28 = vmax.f32 %v1970_v16, %v1986_v21  ;;  %v1953_v29 = vadd.f32 %v1952_v24, %v1888_v7  ;;  %v1954_v30 = vpop.f32.mrb[25].mxu1 }
 0x43c   : > { %2098 = vrot.lane.b32.xlu0 %v3309_v25, %s2615_s7  ;;  %v1955_v31 = vpop.f32.mrb[26].mxu1  ;;  %v2049_v4 = vrot.slane %v2001_v20, 3 }
 0x43d   : > { %v2018_v0 = vrot.slane %v2002_v28, 1  ;;  %v2034_v32 = vrot.slane %v2002_v28, 2  ;;  %v1971_v33 = vmax.f32 %v1953_v29, 0.0  ;;  %v1956_v1 = vadd.f32 %v1955_v31, %v1891_v35  ;;  %v1957_v2 = vpop.f32.mrb[27].mxu1 }
 0x43e   : > { %v2050_v34 = vrot.slane %v2002_v28, 3  ;;  %v2066_v3 = vsel %vm2063_vm7, %v2001_v20, %v2017_v26 }
 0x43f   : > { %v1987_v5 = vrot.slane %v1971_v33, 1  ;;  %v1972_v36 = vmax.f32 %v1956_v1, 0.0  ;;  %v2067_v6 = vsel %vm2063_vm7, %v2002_v28, %v2018_v0  ;;  %v2075_v7 = vsel %vm2072_vm8, %v2066_v3, %v2033_v27 }
 0x440   : > { %v2076_v8 = vsel %vm2072_vm8, %v2067_v6, %v2034_v32  ;;  %v2084_v9 = vsel %vm2081_vm9, %v2075_v7, %v2049_v4 }
 0x441   : > { %v2003_v11 = vmax.f32 %v1971_v33, %v1987_v5  ;;  %v1988_v37 = vrot.slane %v1972_v36, 1  ;;  %v2085_v10 = vsel %vm2081_vm9, %v2076_v8, %v2050_v34 }
 0x442   : > { %v1960_v35 = vpop.f32.mrb[28].mxu1  ;;  %v2091_v12 = vmax.f32 %v2084_v9, %v2085_v10 }
 0x443   : > { %v2019_v39 = vrot.slane %v2003_v11, 1  ;;  %v2035_v41 = vrot.slane %v2003_v11, 2  ;;  %v2004_v42 = vmax.f32 %v1972_v36, %v1988_v37  ;;  %v1961_v43 = vadd.f32 %v1960_v35, %v3299_v38  ;;  %v1962_v44 = vpop.f32.mrb[29].mxu1 }
 0x444   : > { %2100 = vrot.lane.b32.xlu1 %v2091_v12, %s2615_s7  ;;  %v1963_v45 = vpop.f32.mrb[30].mxu1  ;;  %v2051_v51 = vrot.slane %v2003_v11, 3 }
 0x445   : > { %v2020_v46 = vrot.slane %v2004_v42, 1  ;;  %v2036_v47 = vrot.slane %v2004_v42, 2  ;;  %v1973_v48 = vmax.f32 %v1961_v43, 0.0  ;;  %v1964_v49 = vadd.f32 %v1963_v45, %v3301_v40  ;;  %v1965_v50 = vpop.f32.mrb[31].mxu1 }
 0x446   : > { %v2052_v52 = vrot.slane %v2004_v42, 3  ;;  %v2068_v53 = vsel %vm2063_vm7, %v2003_v11, %v2019_v39 }
 0x447   : > { %v1989_v54 = vrot.slane %v1973_v48, 1  ;;  %v1974_v55 = vmax.f32 %v1964_v49, 0.0  ;;  %v2069_v56 = vsel %vm2063_vm7, %v2004_v42, %v2020_v46  ;;  %v2077_v38 = vsel %vm2072_vm8, %v2068_v53, %v2035_v41 }
 0x448   : > { %v2078_v57 = vsel %vm2072_vm8, %v2069_v56, %v2036_v47  ;;  %v2086_v60 = vsel %vm2081_vm9, %v2077_v38, %v2051_v51 }
 0x449   : > { %v2005_v58 = vmax.f32 %v1973_v48, %v1989_v54  ;;  %v1990_v59 = vrot.slane %v1974_v55, 1  ;;  %v2087_v61 = vsel %vm2081_vm9, %v2078_v57, %v2052_v52 }
 0x44a   : > { %v2092_v40 = vmax.f32 %v2086_v60, %v2087_v61 }
 0x44b   : > { %v2021_v62 = vrot.slane %v2005_v58, 1  ;;  %v2037_v63 = vrot.slane %v2005_v58, 2  ;;  %v2006_v13 = vmax.f32 %v1974_v55, %v1990_v59  ;;  %v2053_v18 = vrot.slane %v2005_v58, 3 }
 0x44c   : > { %2102 = vrot.lane.b32.xlu0 %v2092_v40, %s2615_s7 }
 0x44d   : > { %v2022_v14 = vrot.slane %v2006_v13, 1  ;;  %v2038_v15 = vrot.slane %v2006_v13, 2  ;;  %v2070_v16 = vsel %vm2063_vm7, %v2005_v58, %v2021_v62  ;;  %v2054_v19 = vrot.slane %v2006_v13, 3 }
 0x44e   : > { %v2079_v17 = vsel %vm2072_vm8, %v2070_v16, %v2037_v63 }
 0x44f   : > { %v2071_v20 = vsel %vm2063_vm7, %v2006_v13, %v2022_v14  ;;  %v2088_v22 = vsel %vm2081_vm9, %v2079_v17, %v2053_v18 }
 0x450   : > { %v2080_v21 = vsel %vm2072_vm8, %v2071_v20, %v2038_v15 }
 0x451   : > { %v2089_v23 = vsel %vm2081_vm9, %v2080_v21, %v2054_v19 }
 0x452   : > { %v2093_v24 = vmax.f32 %v2088_v22, %v2089_v23 }
 0x454   : > { %2104 = vrot.lane.b32.xlu1 %v2093_v24, %s2615_s7 }
 0x4ae   : > { %v2099_v26 = vpop.permute.xlu0 %2098 }
 0x4af   : > { %v2110_v27 = vmax.f32 %v3309_v25, %v2099_v26 }
 0x4b1   : > { %2118 = vrot.lane.b32.xlu0 %v2110_v27, %s2615_s7  ;;  %2130 = vrot.lane.b32.xlu1 %v2110_v27, %s2618_s14 }
 0x4b5   : > { %2142 = vrot.lane.b32.xlu1 %v2110_v27, %s2627_s27 }
 0x4b6   : > { %v2101_v28 = vpop.permute.xlu1 %2100 }
 0x4b7   : > { %v2111_v29 = vmax.f32 %v2091_v12, %v2101_v28 }
 0x4b9   : > { %2120 = vrot.lane.b32.xlu1 %v2111_v29, %s2615_s7 }
 0x4bd   : > { %2132 = vrot.lane.b32.xlu1 %v2111_v29, %s2618_s14 }
 0x4be   : > { %v2103_v30 = vpop.permute.xlu0 %2102 }
 0x4bf   : > { %v2112_v31 = vmax.f32 %v2092_v40, %v2103_v30 }
 0x4c1   : > { %2122 = vrot.lane.b32.xlu0 %v2112_v31, %s2615_s7  ;;  %2144 = vrot.lane.b32.xlu1 %v2111_v29, %s2627_s27 }
 0x4c5   : > { %2134 = vrot.lane.b32.xlu0 %v2112_v31, %s2618_s14 }
 0x4c6   : > { %v2105_v25 = vpop.permute.xlu1 %2104 }
 0x4c7   : > { %v2113_v0 = vmax.f32 %v2093_v24, %v2105_v25 }
 0x4c9   : > { %2148 = vrot.lane.b32.xlu1 %v2113_v0, %s2627_s27  ;;  %2124 = vrot.lane.b32.xlu0 %v2113_v0, %s2615_s7  ;;  %s2272_s7 = sshll.u32 %s3389_s19, 2 }
 0x4ca   : > { %s222_s28 = scalar_lea.vmem %s3386_s5, %s2272_s7 }
 0x4cd   : > { %2136 = vrot.lane.b32.xlu0 %v2113_v0, %s2618_s14 }
 0x4d1   : > { %2146 = vrot.lane.b32.xlu0 %v2112_v31, %s2627_s27 }
 0x523   : > { %v2131_v32 = vpop.permute.xlu1 %2130  ;;  %v2119_v2 = vpop.permute.xlu0 %2118 }
 0x524   : > { %v2154_v34 = vsel %vm986_vm2, %v2110_v27, %v2119_v2 }
 0x525   : > { %v2158_v8 = vsel %vm1198_vm15, %v2154_v34, %v2131_v32 }
 0x527   : > { %v2143_v33 = vpop.permute.xlu1 %2142 }
 0x528   : > { %v2162_v37 = vsel %vm533_vm11, %v2158_v8, %v2143_v33 }
 0x529   : > { %v2189_v45 = vrot.slane %v2162_v37, 2  ;;  %v2180_v47 = vrot.slane %v2162_v37, 1  ;;  %v2198_v48 = vrot.slane %v2162_v37, 3 }
 0x52b   : > { %v2121_v1 = vpop.permute.xlu1 %2120 }
 0x52c   : > { %v2155_v3 = vsel %vm986_vm2, %v2111_v29, %v2121_v1 }
 0x52f   : > { %v2133_v4 = vpop.permute.xlu1 %2132 }
 0x530   : > { %v2159_v5 = vsel %vm1198_vm15, %v2155_v3, %v2133_v4 }
 0x533   : > { %v2123_v36 = vpop.permute.xlu0 %2122  ;;  %v2145_v6 = vpop.permute.xlu1 %2144 }
 0x534   : > { %v2163_v7 = vsel %vm533_vm11, %v2159_v5, %v2145_v6  ;;  %v2156_v46 = vsel %vm986_vm2, %v2112_v31, %v2123_v36 }
 0x535   : > { %v2170_v11 = vrot.slane %v2163_v7, 7  ;;  %v2190_v41 = vrot.slane %v2163_v7, 1  ;;  %v2199_v51 = vrot.slane %v2163_v7, 2  ;;  %v2181_v58 = vsel %vm2171_vm12, %v2163_v7, %v2180_v47 }
 0x537   : > { %v2135_v9 = vpop.permute.xlu0 %2134  ;;  %v2172_v10 = vsel %vm2171_vm12, %v2170_v11, %v2162_v37  ;;  %v2191_v53 = vsel %vm2171_vm12, %v2190_v41, %v2189_v45  ;;  %v2200_v13 = vsel %vm2171_vm12, %v2199_v51, %v2198_v48 }
 0x538   : > { %v2160_v49 = vsel %vm1198_vm15, %v2156_v46, %v2135_v9 }
 0x53b   : > { %v2125_v35 = vpop.permute.xlu0 %2124  ;;  %v2149_v42 = vpop.permute.xlu1 %2148 }
 0x53c   : > { %v2157_v12 = vsel %vm986_vm2, %v2113_v0, %v2125_v35 }
 0x53f   : > { %v2137_v39 = vpop.permute.xlu0 %2136 }
 0x540   : > { %v2161_v43 = vsel %vm1198_vm15, %v2157_v12, %v2137_v39 }
 0x541   : > { %v2165_v44 = vsel %vm533_vm11, %v2161_v43, %v2149_v42 }
 0x542   : > { %v2193_v54 = vrot.slane %v2165_v44, 7  ;;  %v2176_v59 = vrot.slane %v2165_v44, 5  ;;  %v2184_v61 = vrot.slane %v2165_v44, 6 }
 0x543   : > { %v2147_v50 = vpop.permute.xlu0 %2146 }
 0x544   : > { %v2164_v52 = vsel %vm533_vm11, %v2160_v49, %v2147_v50  ;;  %vm2209_vm11 = vcmask 785408  }
 0x545   : > { %v2173_v55 = vrot.slane %v2164_v52, 6  ;;  %v2182_v56 = vrot.slane %v2164_v52, 7  ;;  %v2201_v38 = vrot.slane %v2164_v52, 1  ;;  %v2192_v57 = vsel %vm2174_vm14, %v2164_v52, %v2191_v53 }
 0x546   : > { %v2194_v60 = vsel %vm2177_vm0, %v2193_v54, %v2192_v57 }
 0x547   : > { %2195 = vrot.lane.b32.xlu1 %v2194_v60, %s2621_s21  ;;  %v2183_v40 = vsel %vm2174_vm14, %v2182_v56, %v2181_v58  ;;  %v2175_v62 = vsel %vm2174_vm14, %v2173_v55, %v2172_v10  ;;  %v2202_v15 = vsel %vm2174_vm14, %v2201_v38, %v2200_v13 }
 0x548   : > { %v2185_v63 = vsel %vm2177_vm0, %v2184_v61, %v2183_v40  ;;  %v2178_v14 = vsel %vm2177_vm0, %v2176_v59, %v2175_v62  ;;  %v2203_v16 = vsel %vm2177_vm0, %v2165_v44, %v2202_v15 }
 0x549   : > { %2186 = vrot.lane.b32.xlu0 %v2185_v63, %s2614_s6 }
 0x54d   : > { %2204 = vrot.lane.b32.xlu0 %v2203_v16, %s2625_s30 }
 0x5b9   : > { %v2196_v19 = vpop.permute.xlu1 %2195 }
 0x5bb   : > { %v2187_v17 = vpop.permute.xlu0 %2186 }
 0x5bc   : > { %v2207_v18 = vsel %vm428_vm6, %v2178_v14, %v2187_v17 }
 0x5bd   : > { %v2208_v21 = vsel %vm1160_vm13, %v2207_v18, %v2196_v19 }
 0x5bf   : > { %v2205_v20 = vpop.permute.xlu0 %2204 }
 0x5c0   : > { %v2210_v22 = vsel %vm2209_vm11, %v2208_v21, %v2205_v20 }
 0x5c1   : > { %2211 = vst [vmem:[%s222_s28] sm:$0xf] %v2210_v22 }
 0x5c2 PF: > { %s15_s18 = sadd.s32 1, %s2610_s18  }
 0x5c3   : > { %p12_p4 = scmp.ge.s32.totalorder %s15_s18, 4  }
 0x5c5   :  { %14 = sbr.rel (!%p12_p4) target bundleno = 1 (0x1), region = 76 }

</bundles_post_ra>
